<compile_context>
chip_gen: v7x
topology: tpu7x:2x2x1
jax: 0.10.0
libtpu: 0.0.40
codegen_flags: <defaults>
</compile_context>

<pallas_src>
import jax
import jax.numpy as jnp
from jax import lax
from jax.experimental import pallas as pl
from jax.experimental.pallas import tpu as pltpu

K1_OUT = 16      # Conv1 out channels
K2_OUT = 11      # Conv2 out channels
KSIZE = 5        # conv kernel size
STRIDE = 2
POOL_K = 15
POOL_S = 10
FC1_IN = 198
FC1_OUT = 64

# Conv2 taps over the phase-split Conv1 output (phase 0 = even output positions,
# phase 1 = odd).  Conv2 output t2 needs conv1[2*t2 + k]:
#   k=0 -> even[t2], k=1 -> odd[t2], k=2 -> even[t2+1], k=3 -> odd[t2+1], k=4 -> even[t2+2]
_CONV2_TAPS = ((0, 0), (1, 0), (0, 1), (1, 1), (0, 2))

_REF_DOT = dict(preferred_element_type=jnp.float32, precision=lax.Precision.HIGHEST)


def _cnn_kernel(xcol_ref, w1_ref, b1_ref, w2_ref, b2_ref, pool_ref,
                wfc1_ref, bfc1_ref, wfc2_ref, bfc2_ref, out_ref,
                rhs2_ref, flat_ref):
    B, _ = out_ref.shape
    k1 = w1_ref.shape[0]                  # 16
    k2 = w2_ref.shape[0]                  # 11
    T2 = pool_ref.shape[0] // B           # 187 = Conv2 output length
    n_pool = pool_ref.shape[1] // B       # 18
    T1 = xcol_ref.shape[1] // (2 * B)     # 189 = per-phase Conv1 output length
    f32 = jnp.float32

    # ---- Conv1 + ReLU: one (16, 20) x (20, 2*B*T1) matmul ----------------------
    h1 = jnp.dot(w1_ref[...], xcol_ref[...], preferred_element_type=f32)
    h1 = jnp.maximum(h1 + b1_ref[...], 0.0)        # (16, 2*B*T1), cols = (phase, b, m)

    # ---- Conv2 im2col: stack 5 shifted (16, T2) slabs into (80, B*T2) scratch ---
    for k, (ph, sh) in enumerate(_CONV2_TAPS):
        for b in range(B):
            src = ph * (B * T1) + b * T1 + sh
            rhs2_ref[k1 * k:k1 * (k + 1), b * T2:(b + 1) * T2] = h1[:, src:src + T2]

    # ---- Conv2 + ReLU: one (11, 80) x (80, B*T2) matmul ------------------------
    h2 = jnp.dot(w2_ref[...], rhs2_ref[...], preferred_element_type=f32)
    h2 = jnp.maximum(h2 + b2_ref[...], 0.0)        # (11, B*T2), cols = (b, t2)

    # ---- AvgPool1d(15, 10): one matmul against block-diagonal pool matrix ------
    pooled = jnp.dot(h2, pool_ref[...], preferred_element_type=f32)   # (11, B*n_pool)

    # ---- Flatten (channel-major, matches torch .view) into (B, 198) scratch ----
    for b in range(B):
        for c in range(k2):
            flat_ref[b:b + 1, c * n_pool:(c + 1) * n_pool] = \
                pooled[c:c + 1, b * n_pool:(b + 1) * n_pool]

    # ---- FC1 + ReLU, FC2 + ReLU (batched over B) --------------------------------
    fc1 = jnp.dot(flat_ref[...], wfc1_ref[...], preferred_element_type=f32)
    fc1 = jnp.maximum(fc1 + bfc1_ref[...], 0.0)    # (B, 64)
    fc2 = jnp.dot(fc1, wfc2_ref[...], preferred_element_type=f32)
    fc2 = jnp.maximum(fc2 + bfc2_ref[...], 0.0)    # (B, out_dim)

    # ---- Softmax along class axis (torch nn.Softmax() -> dim=1 for 2-D) --------
    m = jnp.max(fc2, axis=-1, keepdims=True)
    e = jnp.exp(fc2 - m)
    out_ref[...] = e / jnp.sum(e, axis=-1, keepdims=True)


def cnn_forward(x, params):
    """Pallas implementation of CNN_model.forward (inference)."""
    w1, b1, w2, b2, wfc1, bfc1, wfc2, bfc2 = params
    B, C_in, L = x.shape
    out_dim = wfc2.shape[0]

    L1 = (L - KSIZE) // STRIDE + 1                 # Conv1 output length (378)
    L2 = (L1 - KSIZE) // STRIDE + 1                # Conv2 output length (187)
    n_pool = (L2 - POOL_K) // POOL_S + 1           # 18
    assert L1 % 2 == 0
    assert K2_OUT * n_pool == FC1_IN, "input length inconsistent with FC1(in=198)"
    T1 = L1 // 2                                   # 189 per phase

    # TODO(synk): nn.Dropout(0.5) is treated as identity (eval/inference mode).

    # ---- JAX glue: layout-only im2col / weight reshapes (no conv/FC FLOPs) -----
    # Conv1 im2col: rows ordered (c_in, k) c-major; columns ordered (phase, b, m).
    t_order = jnp.concatenate([2 * jnp.arange(T1), 2 * jnp.arange(T1) + 1])   # (L1,)
    win = STRIDE * t_order[None, :] + jnp.arange(KSIZE)[:, None]              # (5, L1)
    xg = x[:, :, win]                                                         # (B,C,5,L1)
    xg = xg.reshape(B, C_in, KSIZE, 2, T1)
    x_col = xg.transpose(1, 2, 3, 0, 4).reshape(C_in * KSIZE, 2 * B * T1)     # (20, 756)

    w1_2d = w1.reshape(K1_OUT, C_in * KSIZE)                  # (16, 20), cols (c,k)
    b1c = b1.reshape(K1_OUT, 1)
    w2_2d = jnp.transpose(w2, (0, 2, 1)).reshape(K2_OUT, K1_OUT * KSIZE)  # (11,80), cols (k,c)
    b2c = b2.reshape(K2_OUT, 1)

    t = jnp.arange(L2)[:, None]
    j = jnp.arange(n_pool)[None, :]
    pm = (((t >= POOL_S * j) & (t < POOL_S * j + POOL_K))
          .astype(jnp.float32) / POOL_K)                      # (187, 18)
    pool_bd = jnp.kron(jnp.eye(B, dtype=jnp.float32), pm)     # (B*187, B*18) block-diag

    wfc1_t = wfc1.T                                           # (198, 64)
    bfc1_r = bfc1.reshape(1, FC1_OUT)
    wfc2_t = wfc2.T                                           # (64, out_dim)
    bfc2_r = bfc2.reshape(1, out_dim)

    inputs = (x_col, w1_2d, b1c, w2_2d, b2c, pool_bd,
              wfc1_t, bfc1_r, wfc2_t, bfc2_r)

    def full_spec(a):
        return pl.BlockSpec(a.shape, lambda g, n=a.ndim: (0,) * n)

    return pl.pallas_call(
        _cnn_kernel,
        out_shape=jax.ShapeDtypeStruct((B, out_dim), jnp.float32),
        grid=(1,),
        in_specs=[full_spec(a) for a in inputs],
        out_specs=pl.BlockSpec((B, out_dim), lambda g: (0, 0)),
        scratch_shapes=[
            pltpu.VMEM((K1_OUT * KSIZE, B * L2), jnp.float32),   # Conv2 im2col (80, B*187)
            pltpu.VMEM((B, FC1_IN), jnp.float32),                # flattened pooled (B, 198)
        ],
        compiler_params=pltpu.CompilerParams(dimension_semantics=("arbitrary",)),
    )(*inputs)


def reference_forward(x, params):
    """Pure-JAX reference (mirrors the PyTorch forward in eval mode)."""
    w1, b1, w2, b2, wfc1, bfc1, wfc2, bfc2 = params
    dn = ('NCH', 'OIH', 'NCH')
    h = lax.conv_general_dilated(x, w1, window_strides=(STRIDE,), padding='VALID',
                                 dimension_numbers=dn, precision=lax.Precision.HIGHEST)
    h = jax.nn.relu(h + b1[None, :, None])
    h = lax.conv_general_dilated(h, w2, window_strides=(STRIDE,), padding='VALID',
                                 dimension_numbers=dn, precision=lax.Precision.HIGHEST)
    h = jax.nn.relu(h + b2[None, :, None])
    L2 = h.shape[-1]
    n_pool = (L2 - POOL_K) // POOL_S + 1
    pooled = jnp.stack(
        [h[:, :, POOL_S * j:POOL_S * j + POOL_K].mean(axis=-1) for j in range(n_pool)],
        axis=-1)
    flat = pooled.reshape(x.shape[0], -1)
    f1 = jax.nn.relu(jnp.dot(flat, wfc1.T, **_REF_DOT) + bfc1)
    f2 = jax.nn.relu(jnp.dot(f1, wfc2.T, **_REF_DOT) + bfc2)
    return jax.nn.softmax(f2, axis=1)


if __name__ == "__main__":
    # arg.in_channel = 4, arg.out_dim = 5.  Input length 760 is implied by the model:
    # Conv1(s=2,k=5) -> 378, Conv2(s=2,k=5) -> 187, AvgPool(15,10) -> 18, 11*18 = 198.
    B, C_IN, L, OUT_DIM = 2, 4, 760, 5

    key = jax.random.PRNGKey(0)
    keys = jax.random.split(key, 9)

    def uni(k, shape, fan_in):
        bound = 1.0 / float(fan_in) ** 0.5
        return jax.random.uniform(k, shape, jnp.float32, -bound, bound)

    x = jax.random.normal(keys[0], (B, C_IN, L), jnp.float32)
    w1 = uni(keys[1], (K1_OUT, C_IN, KSIZE), C_IN * KSIZE)
    b1 = uni(keys[2], (K1_OUT,), C_IN * KSIZE)
    w2 = uni(keys[3], (K2_OUT, K1_OUT, KSIZE), K1_OUT * KSIZE)
    b2 = uni(keys[4], (K2_OUT,), K1_OUT * KSIZE)
    wfc1 = uni(keys[5], (FC1_OUT, FC1_IN), FC1_IN)
    bfc1 = uni(keys[6], (FC1_OUT,), FC1_IN)
    wfc2 = uni(keys[7], (OUT_DIM, FC1_OUT), FC1_OUT)
    bfc2 = uni(keys[8], (OUT_DIM,), FC1_OUT)
    params = (w1, b1, w2, b2, wfc1, bfc1, wfc2, bfc2)

    out = cnn_forward(x, params)
    jax.block_until_ready(out)

    ref = reference_forward(x, params)
    assert out.shape == (B, OUT_DIM)
    assert bool(jnp.allclose(out, ref, rtol=1e-2, atol=1e-3)), (out, ref)

    print("KERNEL_OK")
</pallas_src>

<mosaic_0001>
module attributes {stable_mosaic.version = 11 : i64} {
  func.func @_cnn_kernel(%arg0: i32, %arg1: memref<20x756xf32, #tpu.memory_space<vmem>>, %arg2: memref<16x20xf32, #tpu.memory_space<vmem>>, %arg3: memref<16x1xf32, #tpu.memory_space<vmem>>, %arg4: memref<11x80xf32, #tpu.memory_space<vmem>>, %arg5: memref<11x1xf32, #tpu.memory_space<vmem>>, %arg6: memref<374x36xf32, #tpu.memory_space<vmem>>, %arg7: memref<198x64xf32, #tpu.memory_space<vmem>>, %arg8: memref<1x64xf32, #tpu.memory_space<vmem>>, %arg9: memref<64x5xf32, #tpu.memory_space<vmem>>, %arg10: memref<1x5xf32, #tpu.memory_space<vmem>>, %arg11: memref<2x5xf32, #tpu.memory_space<vmem>>, %arg12: memref<80x374xf32, #tpu.memory_space<vmem>>, %arg13: memref<2x198xf32, #tpu.memory_space<vmem>>) attributes {dimension_semantics = [#tpu.dimension_semantics<arbitrary>], iteration_bounds = array<i64: 1>, scalar_prefetch = 0 : i64, scratch_operands = 2 : i64, tpu.core_type = #tpu.core_type<tc>, window_params = [{pipeline_mode = #tpu.pipeline_mode<synchronous>, transform_indices = @transform_0, window_bounds = array<i64: 20, 756>}, {pipeline_mode = #tpu.pipeline_mode<synchronous>, transform_indices = @transform_1, window_bounds = array<i64: 16, 20>}, {pipeline_mode = #tpu.pipeline_mode<synchronous>, transform_indices = @transform_2, window_bounds = array<i64: 16, 1>}, {pipeline_mode = #tpu.pipeline_mode<synchronous>, transform_indices = @transform_3, window_bounds = array<i64: 11, 80>}, {pipeline_mode = #tpu.pipeline_mode<synchronous>, transform_indices = @transform_4, window_bounds = array<i64: 11, 1>}, {pipeline_mode = #tpu.pipeline_mode<synchronous>, transform_indices = @transform_5, window_bounds = array<i64: 374, 36>}, {pipeline_mode = #tpu.pipeline_mode<synchronous>, transform_indices = @transform_6, window_bounds = array<i64: 198, 64>}, {pipeline_mode = #tpu.pipeline_mode<synchronous>, transform_indices = @transform_7, window_bounds = array<i64: 1, 64>}, {pipeline_mode = #tpu.pipeline_mode<synchronous>, transform_indices = @transform_8, window_bounds = array<i64: 64, 5>}, {pipeline_mode = #tpu.pipeline_mode<synchronous>, transform_indices = @transform_9, window_bounds = array<i64: 1, 5>}, {pipeline_mode = #tpu.pipeline_mode<synchronous>, transform_indices = @transform_10, window_bounds = array<i64: 2, 5>}]} {
    %c0 = arith.constant 0 : index
    %c0_0 = arith.constant 0 : index
    %0 = vector.load %arg2[%c0, %c0_0] : memref<16x20xf32, #tpu.memory_space<vmem>>, vector<16x20xf32>
    %c0_1 = arith.constant 0 : index
    %c0_2 = arith.constant 0 : index
    %1 = vector.load %arg1[%c0_1, %c0_2] : memref<20x756xf32, #tpu.memory_space<vmem>>, vector<20x756xf32>
    %cst = arith.constant dense<0.000000e+00> : vector<16x756xf32>
    %2 = tpu.matmul %0, %1, %cst {dimension_numbers = #tpu.dot_dimension_numbers<[1], [0], [0], [1], [0, 0, 1, 1], [], []>} : vector<16x20xf32>, vector<20x756xf32>, vector<16x756xf32> -> vector<16x756xf32>
    %c0_3 = arith.constant 0 : index
    %c0_4 = arith.constant 0 : index
    %3 = vector.load %arg3[%c0_3, %c0_4] : memref<16x1xf32, #tpu.memory_space<vmem>>, vector<16x1xf32>
    %4 = vector.broadcast %3 : vector<16x1xf32> to vector<16x756xf32>
    %5 = arith.addf %2, %4 : vector<16x756xf32>
    %cst_5 = arith.constant 0.000000e+00 : f32
    %6 = vector.broadcast %cst_5 : f32 to vector<16x756xf32>
    %7 = arith.maximumf %5, %6 : vector<16x756xf32>
    %8 = vector.extract_strided_slice %7 {offsets = [0, 0], sizes = [16, 187], strides = [1, 1]} : vector<16x756xf32> to vector<16x187xf32>
    %c0_6 = arith.constant 0 : index
    %c0_7 = arith.constant 0 : index
    %9 = vector.load %arg12[%c0_6, %c0_7] : memref<80x374xf32, #tpu.memory_space<vmem>>, vector<16x187xf32>
    tpu.vector_store %arg12[%c0_6, %c0_7], %8 {strides = array<i32>} : memref<80x374xf32, #tpu.memory_space<vmem>>, vector<16x187xf32>,
    %10 = vector.extract_strided_slice %7 {offsets = [0, 189], sizes = [16, 187], strides = [1, 1]} : vector<16x756xf32> to vector<16x187xf32>
    %c0_8 = arith.constant 0 : index
    %c187 = arith.constant 187 : index
    %11 = vector.load %arg12[%c0_8, %c187] : memref<80x374xf32, #tpu.memory_space<vmem>>, vector<16x187xf32>
    tpu.vector_store %arg12[%c0_8, %c187], %10 {strides = array<i32>} : memref<80x374xf32, #tpu.memory_space<vmem>>, vector<16x187xf32>,
    %12 = vector.extract_strided_slice %7 {offsets = [0, 378], sizes = [16, 187], strides = [1, 1]} : vector<16x756xf32> to vector<16x187xf32>
    %c16 = arith.constant 16 : index
    %c0_9 = arith.constant 0 : index
    %13 = vector.load %arg12[%c16, %c0_9] : memref<80x374xf32, #tpu.memory_space<vmem>>, vector<16x187xf32>
    tpu.vector_store %arg12[%c16, %c0_9], %12 {strides = array<i32>} : memref<80x374xf32, #tpu.memory_space<vmem>>, vector<16x187xf32>,
    %14 = vector.extract_strided_slice %7 {offsets = [0, 567], sizes = [16, 187], strides = [1, 1]} : vector<16x756xf32> to vector<16x187xf32>
    %c16_10 = arith.constant 16 : index
    %c187_11 = arith.constant 187 : index
    %15 = vector.load %arg12[%c16_10, %c187_11] : memref<80x374xf32, #tpu.memory_space<vmem>>, vector<16x187xf32>
    tpu.vector_store %arg12[%c16_10, %c187_11], %14 {strides = array<i32>} : memref<80x374xf32, #tpu.memory_space<vmem>>, vector<16x187xf32>,
    %16 = vector.extract_strided_slice %7 {offsets = [0, 1], sizes = [16, 187], strides = [1, 1]} : vector<16x756xf32> to vector<16x187xf32>
    %c32 = arith.constant 32 : index
    %c0_12 = arith.constant 0 : index
    %17 = vector.load %arg12[%c32, %c0_12] : memref<80x374xf32, #tpu.memory_space<vmem>>, vector<16x187xf32>
    tpu.vector_store %arg12[%c32, %c0_12], %16 {strides = array<i32>} : memref<80x374xf32, #tpu.memory_space<vmem>>, vector<16x187xf32>,
    %18 = vector.extract_strided_slice %7 {offsets = [0, 190], sizes = [16, 187], strides = [1, 1]} : vector<16x756xf32> to vector<16x187xf32>
    %c32_13 = arith.constant 32 : index
    %c187_14 = arith.constant 187 : index
    %19 = vector.load %arg12[%c32_13, %c187_14] : memref<80x374xf32, #tpu.memory_space<vmem>>, vector<16x187xf32>
    tpu.vector_store %arg12[%c32_13, %c187_14], %18 {strides = array<i32>} : memref<80x374xf32, #tpu.memory_space<vmem>>, vector<16x187xf32>,
    %20 = vector.extract_strided_slice %7 {offsets = [0, 379], sizes = [16, 187], strides = [1, 1]} : vector<16x756xf32> to vector<16x187xf32>
    %c48 = arith.constant 48 : index
    %c0_15 = arith.constant 0 : index
    %21 = vector.load %arg12[%c48, %c0_15] : memref<80x374xf32, #tpu.memory_space<vmem>>, vector<16x187xf32>
    tpu.vector_store %arg12[%c48, %c0_15], %20 {strides = array<i32>} : memref<80x374xf32, #tpu.memory_space<vmem>>, vector<16x187xf32>,
    %22 = vector.extract_strided_slice %7 {offsets = [0, 568], sizes = [16, 187], strides = [1, 1]} : vector<16x756xf32> to vector<16x187xf32>
    %c48_16 = arith.constant 48 : index
    %c187_17 = arith.constant 187 : index
    %23 = vector.load %arg12[%c48_16, %c187_17] : memref<80x374xf32, #tpu.memory_space<vmem>>, vector<16x187xf32>
    tpu.vector_store %arg12[%c48_16, %c187_17], %22 {strides = array<i32>} : memref<80x374xf32, #tpu.memory_space<vmem>>, vector<16x187xf32>,
    %24 = vector.extract_strided_slice %7 {offsets = [0, 2], sizes = [16, 187], strides = [1, 1]} : vector<16x756xf32> to vector<16x187xf32>
    %c64 = arith.constant 64 : index
    %c0_18 = arith.constant 0 : index
    %25 = vector.load %arg12[%c64, %c0_18] : memref<80x374xf32, #tpu.memory_space<vmem>>, vector<16x187xf32>
    tpu.vector_store %arg12[%c64, %c0_18], %24 {strides = array<i32>} : memref<80x374xf32, #tpu.memory_space<vmem>>, vector<16x187xf32>,
    %26 = vector.extract_strided_slice %7 {offsets = [0, 191], sizes = [16, 187], strides = [1, 1]} : vector<16x756xf32> to vector<16x187xf32>
    %c64_19 = arith.constant 64 : index
    %c187_20 = arith.constant 187 : index
    %27 = vector.load %arg12[%c64_19, %c187_20] : memref<80x374xf32, #tpu.memory_space<vmem>>, vector<16x187xf32>
    tpu.vector_store %arg12[%c64_19, %c187_20], %26 {strides = array<i32>} : memref<80x374xf32, #tpu.memory_space<vmem>>, vector<16x187xf32>,
    %c0_21 = arith.constant 0 : index
    %c0_22 = arith.constant 0 : index
    %28 = vector.load %arg4[%c0_21, %c0_22] : memref<11x80xf32, #tpu.memory_space<vmem>>, vector<11x80xf32>
    %c0_23 = arith.constant 0 : index
    %c0_24 = arith.constant 0 : index
    %29 = vector.load %arg12[%c0_23, %c0_24] : memref<80x374xf32, #tpu.memory_space<vmem>>, vector<80x374xf32>
    %cst_25 = arith.constant dense<0.000000e+00> : vector<11x374xf32>
    %30 = tpu.matmul %28, %29, %cst_25 {dimension_numbers = #tpu.dot_dimension_numbers<[1], [0], [0], [1], [0, 0, 1, 1], [], []>} : vector<11x80xf32>, vector<80x374xf32>, vector<11x374xf32> -> vector<11x374xf32>
    %c0_26 = arith.constant 0 : index
    %c0_27 = arith.constant 0 : index
    %31 = vector.load %arg5[%c0_26, %c0_27] : memref<11x1xf32, #tpu.memory_space<vmem>>, vector<11x1xf32>
    %32 = vector.broadcast %31 : vector<11x1xf32> to vector<11x374xf32>
    %33 = arith.addf %30, %32 : vector<11x374xf32>
    %cst_28 = arith.constant 0.000000e+00 : f32
    %34 = vector.broadcast %cst_28 : f32 to vector<11x374xf32>
    %35 = arith.maximumf %33, %34 : vector<11x374xf32>
    %c0_29 = arith.constant 0 : index
    %c0_30 = arith.constant 0 : index
    %36 = vector.load %arg6[%c0_29, %c0_30] : memref<374x36xf32, #tpu.memory_space<vmem>>, vector<374x36xf32>
    %cst_31 = arith.constant dense<0.000000e+00> : vector<11x36xf32>
    %37 = tpu.matmul %35, %36, %cst_31 {dimension_numbers = #tpu.dot_dimension_numbers<[1], [0], [0], [1], [0, 0, 1, 1], [], []>} : vector<11x374xf32>, vector<374x36xf32>, vector<11x36xf32> -> vector<11x36xf32>
    %38 = vector.extract_strided_slice %37 {offsets = [0, 0], sizes = [1, 18], strides = [1, 1]} : vector<11x36xf32> to vector<1x18xf32>
    %c0_32 = arith.constant 0 : index
    %c0_33 = arith.constant 0 : index
    %39 = vector.load %arg13[%c0_32, %c0_33] : memref<2x198xf32, #tpu.memory_space<vmem>>, vector<1x18xf32>
    tpu.vector_store %arg13[%c0_32, %c0_33], %38 {strides = array<i32>} : memref<2x198xf32, #tpu.memory_space<vmem>>, vector<1x18xf32>,
    %40 = vector.extract_strided_slice %37 {offsets = [1, 0], sizes = [1, 18], strides = [1, 1]} : vector<11x36xf32> to vector<1x18xf32>
    %c0_34 = arith.constant 0 : index
    %c18 = arith.constant 18 : index
    %41 = vector.load %arg13[%c0_34, %c18] : memref<2x198xf32, #tpu.memory_space<vmem>>, vector<1x18xf32>
    tpu.vector_store %arg13[%c0_34, %c18], %40 {strides = array<i32>} : memref<2x198xf32, #tpu.memory_space<vmem>>, vector<1x18xf32>,
    %42 = vector.extract_strided_slice %37 {offsets = [2, 0], sizes = [1, 18], strides = [1, 1]} : vector<11x36xf32> to vector<1x18xf32>
    %c0_35 = arith.constant 0 : index
    %c36 = arith.constant 36 : index
    %43 = vector.load %arg13[%c0_35, %c36] : memref<2x198xf32, #tpu.memory_space<vmem>>, vector<1x18xf32>
    tpu.vector_store %arg13[%c0_35, %c36], %42 {strides = array<i32>} : memref<2x198xf32, #tpu.memory_space<vmem>>, vector<1x18xf32>,
    %44 = vector.extract_strided_slice %37 {offsets = [3, 0], sizes = [1, 18], strides = [1, 1]} : vector<11x36xf32> to vector<1x18xf32>
    %c0_36 = arith.constant 0 : index
    %c54 = arith.constant 54 : index
    %45 = vector.load %arg13[%c0_36, %c54] : memref<2x198xf32, #tpu.memory_space<vmem>>, vector<1x18xf32>
    tpu.vector_store %arg13[%c0_36, %c54], %44 {strides = array<i32>} : memref<2x198xf32, #tpu.memory_space<vmem>>, vector<1x18xf32>,
    %46 = vector.extract_strided_slice %37 {offsets = [4, 0], sizes = [1, 18], strides = [1, 1]} : vector<11x36xf32> to vector<1x18xf32>
    %c0_37 = arith.constant 0 : index
    %c72 = arith.constant 72 : index
    %47 = vector.load %arg13[%c0_37, %c72] : memref<2x198xf32, #tpu.memory_space<vmem>>, vector<1x18xf32>
    tpu.vector_store %arg13[%c0_37, %c72], %46 {strides = array<i32>} : memref<2x198xf32, #tpu.memory_space<vmem>>, vector<1x18xf32>,
    %48 = vector.extract_strided_slice %37 {offsets = [5, 0], sizes = [1, 18], strides = [1, 1]} : vector<11x36xf32> to vector<1x18xf32>
    %c0_38 = arith.constant 0 : index
    %c90 = arith.constant 90 : index
    %49 = vector.load %arg13[%c0_38, %c90] : memref<2x198xf32, #tpu.memory_space<vmem>>, vector<1x18xf32>
    tpu.vector_store %arg13[%c0_38, %c90], %48 {strides = array<i32>} : memref<2x198xf32, #tpu.memory_space<vmem>>, vector<1x18xf32>,
    %50 = vector.extract_strided_slice %37 {offsets = [6, 0], sizes = [1, 18], strides = [1, 1]} : vector<11x36xf32> to vector<1x18xf32>
    %c0_39 = arith.constant 0 : index
    %c108 = arith.constant 108 : index
    %51 = vector.load %arg13[%c0_39, %c108] : memref<2x198xf32, #tpu.memory_space<vmem>>, vector<1x18xf32>
    tpu.vector_store %arg13[%c0_39, %c108], %50 {strides = array<i32>} : memref<2x198xf32, #tpu.memory_space<vmem>>, vector<1x18xf32>,
    %52 = vector.extract_strided_slice %37 {offsets = [7, 0], sizes = [1, 18], strides = [1, 1]} : vector<11x36xf32> to vector<1x18xf32>
    %c0_40 = arith.constant 0 : index
    %c126 = arith.constant 126 : index
    %53 = vector.load %arg13[%c0_40, %c126] : memref<2x198xf32, #tpu.memory_space<vmem>>, vector<1x18xf32>
    tpu.vector_store %arg13[%c0_40, %c126], %52 {strides = array<i32>} : memref<2x198xf32, #tpu.memory_space<vmem>>, vector<1x18xf32>,
    %54 = vector.extract_strided_slice %37 {offsets = [8, 0], sizes = [1, 18], strides = [1, 1]} : vector<11x36xf32> to vector<1x18xf32>
    %c0_41 = arith.constant 0 : index
    %c144 = arith.constant 144 : index
    %55 = vector.load %arg13[%c0_41, %c144] : memref<2x198xf32, #tpu.memory_space<vmem>>, vector<1x18xf32>
    tpu.vector_store %arg13[%c0_41, %c144], %54 {strides = array<i32>} : memref<2x198xf32, #tpu.memory_space<vmem>>, vector<1x18xf32>,
    %56 = vector.extract_strided_slice %37 {offsets = [9, 0], sizes = [1, 18], strides = [1, 1]} : vector<11x36xf32> to vector<1x18xf32>
    %c0_42 = arith.constant 0 : index
    %c162 = arith.constant 162 : index
    %57 = vector.load %arg13[%c0_42, %c162] : memref<2x198xf32, #tpu.memory_space<vmem>>, vector<1x18xf32>
    tpu.vector_store %arg13[%c0_42, %c162], %56 {strides = array<i32>} : memref<2x198xf32, #tpu.memory_space<vmem>>, vector<1x18xf32>,
    %58 = vector.extract_strided_slice %37 {offsets = [10, 0], sizes = [1, 18], strides = [1, 1]} : vector<11x36xf32> to vector<1x18xf32>
    %c0_43 = arith.constant 0 : index
    %c180 = arith.constant 180 : index
    %59 = vector.load %arg13[%c0_43, %c180] : memref<2x198xf32, #tpu.memory_space<vmem>>, vector<1x18xf32>
    tpu.vector_store %arg13[%c0_43, %c180], %58 {strides = array<i32>} : memref<2x198xf32, #tpu.memory_space<vmem>>, vector<1x18xf32>,
    %60 = vector.extract_strided_slice %37 {offsets = [0, 18], sizes = [1, 18], strides = [1, 1]} : vector<11x36xf32> to vector<1x18xf32>
    %c1 = arith.constant 1 : index
    %c0_44 = arith.constant 0 : index
    %61 = vector.load %arg13[%c1, %c0_44] : memref<2x198xf32, #tpu.memory_space<vmem>>, vector<1x18xf32>
    tpu.vector_store %arg13[%c1, %c0_44], %60 {strides = array<i32>} : memref<2x198xf32, #tpu.memory_space<vmem>>, vector<1x18xf32>,
    %62 = vector.extract_strided_slice %37 {offsets = [1, 18], sizes = [1, 18], strides = [1, 1]} : vector<11x36xf32> to vector<1x18xf32>
    %c1_45 = arith.constant 1 : index
    %c18_46 = arith.constant 18 : index
    %63 = vector.load %arg13[%c1_45, %c18_46] : memref<2x198xf32, #tpu.memory_space<vmem>>, vector<1x18xf32>
    tpu.vector_store %arg13[%c1_45, %c18_46], %62 {strides = array<i32>} : memref<2x198xf32, #tpu.memory_space<vmem>>, vector<1x18xf32>,
    %64 = vector.extract_strided_slice %37 {offsets = [2, 18], sizes = [1, 18], strides = [1, 1]} : vector<11x36xf32> to vector<1x18xf32>
    %c1_47 = arith.constant 1 : index
    %c36_48 = arith.constant 36 : index
    %65 = vector.load %arg13[%c1_47, %c36_48] : memref<2x198xf32, #tpu.memory_space<vmem>>, vector<1x18xf32>
    tpu.vector_store %arg13[%c1_47, %c36_48], %64 {strides = array<i32>} : memref<2x198xf32, #tpu.memory_space<vmem>>, vector<1x18xf32>,
    %66 = vector.extract_strided_slice %37 {offsets = [3, 18], sizes = [1, 18], strides = [1, 1]} : vector<11x36xf32> to vector<1x18xf32>
    %c1_49 = arith.constant 1 : index
    %c54_50 = arith.constant 54 : index
    %67 = vector.load %arg13[%c1_49, %c54_50] : memref<2x198xf32, #tpu.memory_space<vmem>>, vector<1x18xf32>
    tpu.vector_store %arg13[%c1_49, %c54_50], %66 {strides = array<i32>} : memref<2x198xf32, #tpu.memory_space<vmem>>, vector<1x18xf32>,
    %68 = vector.extract_strided_slice %37 {offsets = [4, 18], sizes = [1, 18], strides = [1, 1]} : vector<11x36xf32> to vector<1x18xf32>
    %c1_51 = arith.constant 1 : index
    %c72_52 = arith.constant 72 : index
    %69 = vector.load %arg13[%c1_51, %c72_52] : memref<2x198xf32, #tpu.memory_space<vmem>>, vector<1x18xf32>
    tpu.vector_store %arg13[%c1_51, %c72_52], %68 {strides = array<i32>} : memref<2x198xf32, #tpu.memory_space<vmem>>, vector<1x18xf32>,
    %70 = vector.extract_strided_slice %37 {offsets = [5, 18], sizes = [1, 18], strides = [1, 1]} : vector<11x36xf32> to vector<1x18xf32>
    %c1_53 = arith.constant 1 : index
    %c90_54 = arith.constant 90 : index
    %71 = vector.load %arg13[%c1_53, %c90_54] : memref<2x198xf32, #tpu.memory_space<vmem>>, vector<1x18xf32>
    tpu.vector_store %arg13[%c1_53, %c90_54], %70 {strides = array<i32>} : memref<2x198xf32, #tpu.memory_space<vmem>>, vector<1x18xf32>,
    %72 = vector.extract_strided_slice %37 {offsets = [6, 18], sizes = [1, 18], strides = [1, 1]} : vector<11x36xf32> to vector<1x18xf32>
    %c1_55 = arith.constant 1 : index
    %c108_56 = arith.constant 108 : index
    %73 = vector.load %arg13[%c1_55, %c108_56] : memref<2x198xf32, #tpu.memory_space<vmem>>, vector<1x18xf32>
    tpu.vector_store %arg13[%c1_55, %c108_56], %72 {strides = array<i32>} : memref<2x198xf32, #tpu.memory_space<vmem>>, vector<1x18xf32>,
    %74 = vector.extract_strided_slice %37 {offsets = [7, 18], sizes = [1, 18], strides = [1, 1]} : vector<11x36xf32> to vector<1x18xf32>
    %c1_57 = arith.constant 1 : index
    %c126_58 = arith.constant 126 : index
    %75 = vector.load %arg13[%c1_57, %c126_58] : memref<2x198xf32, #tpu.memory_space<vmem>>, vector<1x18xf32>
    tpu.vector_store %arg13[%c1_57, %c126_58], %74 {strides = array<i32>} : memref<2x198xf32, #tpu.memory_space<vmem>>, vector<1x18xf32>,
    %76 = vector.extract_strided_slice %37 {offsets = [8, 18], sizes = [1, 18], strides = [1, 1]} : vector<11x36xf32> to vector<1x18xf32>
    %c1_59 = arith.constant 1 : index
    %c144_60 = arith.constant 144 : index
    %77 = vector.load %arg13[%c1_59, %c144_60] : memref<2x198xf32, #tpu.memory_space<vmem>>, vector<1x18xf32>
    tpu.vector_store %arg13[%c1_59, %c144_60], %76 {strides = array<i32>} : memref<2x198xf32, #tpu.memory_space<vmem>>, vector<1x18xf32>,
    %78 = vector.extract_strided_slice %37 {offsets = [9, 18], sizes = [1, 18], strides = [1, 1]} : vector<11x36xf32> to vector<1x18xf32>
    %c1_61 = arith.constant 1 : index
    %c162_62 = arith.constant 162 : index
    %79 = vector.load %arg13[%c1_61, %c162_62] : memref<2x198xf32, #tpu.memory_space<vmem>>, vector<1x18xf32>
    tpu.vector_store %arg13[%c1_61, %c162_62], %78 {strides = array<i32>} : memref<2x198xf32, #tpu.memory_space<vmem>>, vector<1x18xf32>,
    %80 = vector.extract_strided_slice %37 {offsets = [10, 18], sizes = [1, 18], strides = [1, 1]} : vector<11x36xf32> to vector<1x18xf32>
    %c1_63 = arith.constant 1 : index
    %c180_64 = arith.constant 180 : index
    %81 = vector.load %arg13[%c1_63, %c180_64] : memref<2x198xf32, #tpu.memory_space<vmem>>, vector<1x18xf32>
    tpu.vector_store %arg13[%c1_63, %c180_64], %80 {strides = array<i32>} : memref<2x198xf32, #tpu.memory_space<vmem>>, vector<1x18xf32>,
    %c0_65 = arith.constant 0 : index
    %c0_66 = arith.constant 0 : index
    %82 = vector.load %arg13[%c0_65, %c0_66] : memref<2x198xf32, #tpu.memory_space<vmem>>, vector<2x198xf32>
    %c0_67 = arith.constant 0 : index
    %c0_68 = arith.constant 0 : index
    %83 = vector.load %arg7[%c0_67, %c0_68] : memref<198x64xf32, #tpu.memory_space<vmem>>, vector<198x64xf32>
    %cst_69 = arith.constant dense<0.000000e+00> : vector<2x64xf32>
    %84 = tpu.matmul %82, %83, %cst_69 {dimension_numbers = #tpu.dot_dimension_numbers<[1], [0], [0], [1], [0, 0, 1, 1], [], []>} : vector<2x198xf32>, vector<198x64xf32>, vector<2x64xf32> -> vector<2x64xf32>
    %c0_70 = arith.constant 0 : index
    %c0_71 = arith.constant 0 : index
    %85 = vector.load %arg8[%c0_70, %c0_71] : memref<1x64xf32, #tpu.memory_space<vmem>>, vector<1x64xf32>
    %86 = vector.broadcast %85 : vector<1x64xf32> to vector<2x64xf32>
    %87 = arith.addf %84, %86 : vector<2x64xf32>
    %cst_72 = arith.constant 0.000000e+00 : f32
    %88 = vector.broadcast %cst_72 : f32 to vector<2x64xf32>
    %89 = arith.maximumf %87, %88 : vector<2x64xf32>
    %c0_73 = arith.constant 0 : index
    %c0_74 = arith.constant 0 : index
    %90 = vector.load %arg9[%c0_73, %c0_74] : memref<64x5xf32, #tpu.memory_space<vmem>>, vector<64x5xf32>
    %cst_75 = arith.constant dense<0.000000e+00> : vector<2x5xf32>
    %91 = tpu.matmul %89, %90, %cst_75 {dimension_numbers = #tpu.dot_dimension_numbers<[1], [0], [0], [1], [0, 0, 1, 1], [], []>} : vector<2x64xf32>, vector<64x5xf32>, vector<2x5xf32> -> vector<2x5xf32>
    %c0_76 = arith.constant 0 : index
    %c0_77 = arith.constant 0 : index
    %92 = vector.load %arg10[%c0_76, %c0_77] : memref<1x5xf32, #tpu.memory_space<vmem>>, vector<1x5xf32>
    %93 = vector.broadcast %92 : vector<1x5xf32> to vector<2x5xf32>
    %94 = arith.addf %91, %93 : vector<2x5xf32>
    %cst_78 = arith.constant 0.000000e+00 : f32
    %95 = vector.broadcast %cst_78 : f32 to vector<2x5xf32>
    %96 = arith.maximumf %94, %95 : vector<2x5xf32>
    %cst_79 = arith.constant dense<0xFF800000> : vector<2xf32>
    %97 = vector.multi_reduction <maximumf>, %96, %cst_79 [1] : vector<2x5xf32> to vector<2xf32>
    %98 = vector.shape_cast %97 : vector<2xf32> to vector<2x1xf32>
    %99 = vector.broadcast %98 : vector<2x1xf32> to vector<2x5xf32>
    %100 = arith.subf %96, %99 : vector<2x5xf32>
    %101 = math.exp %100 : vector<2x5xf32>
    %cst_80 = arith.constant dense<0.000000e+00> : vector<2xf32>
    %102 = vector.multi_reduction <add>, %101, %cst_80 [1] : vector<2x5xf32> to vector<2xf32>
    %103 = vector.shape_cast %102 : vector<2xf32> to vector<2x1xf32>
    %104 = vector.broadcast %103 : vector<2x1xf32> to vector<2x5xf32>
    %105 = arith.divf %101, %104 : vector<2x5xf32>
    %c0_81 = arith.constant 0 : index
    %c0_82 = arith.constant 0 : index
    %106 = vector.load %arg11[%c0_81, %c0_82] : memref<2x5xf32, #tpu.memory_space<vmem>>, vector<2x5xf32>
    tpu.vector_store %arg11[%c0_81, %c0_82], %105 {strides = array<i32>} : memref<2x5xf32, #tpu.memory_space<vmem>>, vector<2x5xf32>,
    return
  }
  func.func @transform_0(%arg0: i32) -> (i32, i32) {
    %c0_i32 = arith.constant 0 : i32
    %c0_i32_0 = arith.constant 0 : i32
    %c0_i32_1 = arith.constant 0 : i32
    return %c0_i32, %c0_i32_0 : i32, i32
  }
  func.func @transform_1(%arg0: i32) -> (i32, i32) {
    %c0_i32 = arith.constant 0 : i32
    %c0_i32_0 = arith.constant 0 : i32
    %c0_i32_1 = arith.constant 0 : i32
    return %c0_i32, %c0_i32_0 : i32, i32
  }
  func.func @transform_2(%arg0: i32) -> (i32, i32) {
    %c0_i32 = arith.constant 0 : i32
    %c0_i32_0 = arith.constant 0 : i32
    %c0_i32_1 = arith.constant 0 : i32
    return %c0_i32, %c0_i32_0 : i32, i32
  }
  func.func @transform_3(%arg0: i32) -> (i32, i32) {
    %c0_i32 = arith.constant 0 : i32
    %c0_i32_0 = arith.constant 0 : i32
    %c0_i32_1 = arith.constant 0 : i32
    return %c0_i32, %c0_i32_0 : i32, i32
  }
  func.func @transform_4(%arg0: i32) -> (i32, i32) {
    %c0_i32 = arith.constant 0 : i32
    %c0_i32_0 = arith.constant 0 : i32
    %c0_i32_1 = arith.constant 0 : i32
    return %c0_i32, %c0_i32_0 : i32, i32
  }
  func.func @transform_5(%arg0: i32) -> (i32, i32) {
    %c0_i32 = arith.constant 0 : i32
    %c0_i32_0 = arith.constant 0 : i32
    %c0_i32_1 = arith.constant 0 : i32
    return %c0_i32, %c0_i32_0 : i32, i32
  }
  func.func @transform_6(%arg0: i32) -> (i32, i32) {
    %c0_i32 = arith.constant 0 : i32
    %c0_i32_0 = arith.constant 0 : i32
    %c0_i32_1 = arith.constant 0 : i32
    return %c0_i32, %c0_i32_0 : i32, i32
  }
  func.func @transform_7(%arg0: i32) -> (i32, i32) {
    %c0_i32 = arith.constant 0 : i32
    %c0_i32_0 = arith.constant 0 : i32
    %c0_i32_1 = arith.constant 0 : i32
    return %c0_i32, %c0_i32_0 : i32, i32
  }
  func.func @transform_8(%arg0: i32) -> (i32, i32) {
    %c0_i32 = arith.constant 0 : i32
    %c0_i32_0 = arith.constant 0 : i32
    %c0_i32_1 = arith.constant 0 : i32
    return %c0_i32, %c0_i32_0 : i32, i32
  }
  func.func @transform_9(%arg0: i32) -> (i32, i32) {
    %c0_i32 = arith.constant 0 : i32
    %c0_i32_0 = arith.constant 0 : i32
    %c0_i32_1 = arith.constant 0 : i32
    return %c0_i32, %c0_i32_0 : i32, i32
  }
  func.func @transform_10(%arg0: i32) -> (i32, i32) {
    %c0_i32 = arith.constant 0 : i32
    %c0_i32_0 = arith.constant 0 : i32
    %c0_i32_1 = arith.constant 0 : i32
    return %c0_i32, %c0_i32_0 : i32, i32
  }
}

</mosaic_0001>

<bundles_post_ra>
// kernel: tpu_custom_call.1
= control target key start
LH: loop header
LB: loop body
LE: loop exit
PB: predicated region body
PF: predicated region fallthrough
CT: control target
= control target key end

     0   :  { %v1715_v7 = vmov 0.0   ;;  %vm75_vm0 = vcmask 1043456   ;;  %v1716_v13 = vmov 0   ;;  %vm68_vm1 = vcmask 162816   ;;  %s2351_s0 = inlined_call_operand.vmem [shape: f32[20,756], index: 0, kind: input, shape index: {}]   ;;  %s2352_s1 = inlined_call_operand.vmem [shape: f32[16,20], index: 1, kind: input, shape index: {}]   ;;  %s2353_s2 = inlined_call_operand.vmem [shape: f32[16,1], index: 2, kind: input, shape index: {}]   ;;  %s2354_s3 = inlined_call_operand.vmem [shape: f32[11,80], index: 3, kind: input, shape index: {}]   ;;  %s2355_s4 = inlined_call_operand.vmem [shape: f32[11,1], index: 4, kind: input, shape index: {}]   ;;  %s2356_s5 = inlined_call_operand.vmem [shape: f32[374,36], index: 5, kind: input, shape index: {}]   ;;  %s2357_s6 = inlined_call_operand.vmem [shape: f32[198,64], index: 6, kind: input, shape index: {}]   ;;  %s2358_s7 = inlined_call_operand.vmem [shape: f32[1,64], index: 7, kind: input, shape index: {}]   ;;  %s2359_s8 = inlined_call_operand.vmem [shape: f32[64,5], index: 8, kind: input, shape index: {}]   ;;  %s2360_s9 = inlined_call_operand.vmem [shape: f32[1,5], index: 9, kind: input, shape index: {}]   ;;  %s2361_s10 = inlined_call_operand.hbm [shape: f32[2,5], index: 10, kind: output, shape index: {}]  }
   0x1   :  { %v39_v0 = vld [vmem:[%s2351_s0 + $0x8] sm:$0xff]  ;;  %v45_v1 = vld [vmem:[%s2351_s0 + $0x38] sm:$0xff]  ;;  %v38_v5 = vld [vmem:[%s2351_s0] sm:$0xff]  ;;  %158 = vmatprep.mubr.f32.mxu1 %v1715_v7  ;;  %312 = vmatprep.mubr.f32.mxu0 %v1715_v7 }
   0x2   :  { %v43_v2 = vld [vmem:[%s2351_s0 + $0x28] sm:$0xff]  ;;  %v1501_v3 = vpack.c.bf16 %v45_v1, %v39_v0  ;;  %v49_v4 = vld [vmem:[%s2351_s0 + $0x58] sm:$0xff]  ;;  %v44_v6 = vld [vmem:[%s2351_s0 + $0x30] sm:$0xff]  ;;  %1685 = vset.pattern.permute.xlu0 %v1716_v13  ;;  %1686 = vset.pattern.permute.xlu1 %v1716_v13 }
   0x3   :  { %v1509_v8 = vpack.c.bf16 %v49_v4, %v43_v2  ;;  %v1503_v9 = vpack.c.bf16 %v44_v6, %v38_v5  ;;  %v42_v10 = vld [vmem:[%s2351_s0 + $0x20] sm:$0xff]  ;;  %v48_v11 = vld [vmem:[%s2351_s0 + $0x50] sm:$0xff]  ;;  %v51_v12 = vld [vmem:[%s2351_s0 + $0x68] sm:$0xf] }
   0x4   :  { %1502 = vmatprep.subr.bf16.mxu1 %v1501_v3  ;;  %v1511_v14 = vpack.c.bf16 %v48_v11, %v42_v10  ;;  %v55_v15 = vld [vmem:[%s2351_s0 + $0x88] sm:$0xf]  ;;  %v41_v16 = vld [vmem:[%s2351_s0 + $0x18] sm:$0xff]  ;;  %v50_v18 = vld [vmem:[%s2351_s0 + $0x60] sm:$0xf] }
   0x5   :  { %1510 = vmatprep.subr.bf16.mxu0 %v1509_v8  ;;  %1504 = vmatpush1.bf16.msra.mxu1 %v1503_v9  ;;  %v47_v17 = vld [vmem:[%s2351_s0 + $0x48] sm:$0xff]  ;;  %v40_v19 = vld [vmem:[%s2351_s0 + $0x10] sm:$0xff]  ;;  %v46_v20 = vld [vmem:[%s2351_s0 + $0x40] sm:$0xff] }
   0x6   :  { %1512 = vmatpush1.bf16.msra.mxu0 %v1511_v14  ;;  %1325 = vmatprep.subr.msk.mxu1 %vm75_vm0, %v51_v12  ;;  %v54_v21 = vld [vmem:[%s2351_s0 + $0x80] sm:$0xf]  ;;  %v1505_v23 = vpack.c.bf16 %v47_v17, %v41_v16  ;;  %v1507_v25 = vpack.c.bf16 %v46_v20, %v40_v19 }
   0x7   :  { %1333 = vmatprep.subr.msk.mxu0 %vm75_vm0, %v55_v15  ;;  %v36_v22 = vld [vmem:[%s2352_s1] sm:$0xff] }
   0x8   :  { %v56_v24 = vld [vmem:[%s2353_s2] sm:$0xff] }
   0x9   :  { %60 = vperm.xlu0 %1685, %v56_v24  }
   0xa   :  { %15 = vsyncpa [#allocation5], 0  ;;  %1326 = vmatpush1.msk.msra.mxu1 %vm75_vm0, %v50_v18  ;;  %1334 = vmatpush1.msk.msra.mxu0 %vm75_vm0, %v54_v21  ;;  %v53_v26 = vld [vmem:[%s2351_s0 + $0x78] sm:$0xf]  ;;  %v37_v27 = vld [vmem:[%s2352_s1 + $0x8] sm:$0xff]  ;;  %vm338_vm2 = vcmask 482304  }
   0xb   :  { %1327 = vmatmul.mubr.msk.f32.vlgmr.msra.gmra.mrb[0].mxu1 %vm68_vm1, %v36_v22  ;;  %1335 = vmatmul.mubr.msk.f32.vlgmr.msra.gmra.mrb[0].mxu0 %vm68_vm1, %v36_v22  ;;  %v57_v28 = vld [vmem:[%s2353_s2 + $0x8] sm:$0xff]  ;;  %v52_v29 = vld [vmem:[%s2351_s0 + $0x70] sm:$0xf]  ;;  %s1717_s0 = smov 4   ;;  %s1718_s1 = smov 6   ;;  %v566_v3 = vld [vmem:[%s2355_s4] sm:$0xff] }
   0xc   :  { %1506 = vmatprep.subr.bf16.mxu1 %v1505_v23  ;;  %164 = vmatprep.mubr.f32.mxu1 %v1715_v7  ;;  %s1719_s2 = smov 5   ;;  %s1720_s17 = smov 127   ;;  %v567_v5 = vld [vmem:[%s2355_s4 + $0x8] sm:$0x7]  ;;  %v759_v6 = vld [vmem:[%s2356_s5 + $0x80] sm:$0xff]  ;;  %v761_v12 = vld [vmem:[%s2356_s5 + $0x90] sm:$0xff] }
   0xd   :  { %1508 = vmatpush1.bf16.msra.mxu1 %v1507_v25  ;;  %318 = vmatprep.mubr.f32.mxu0 %v1715_v7  ;;  %s1721_s18 = smov 126   ;;  %s1722_s19 = smov 3   ;;  %v760_v8 = vld [vmem:[%s2356_s5 + $0x88] sm:$0xff]  ;;  %v743_v10 = vld [vmem:[%s2356_s5] sm:$0xff]  ;;  %v762_v14 = vld [vmem:[%s2356_s5 + $0x98] sm:$0xff]  ;;  %vm427_vm3 = vcmask 1039360  }
   0xe   :  { %1329 = vmatprep.subr.msk.mxu1 %vm75_vm0, %v53_v26  ;;  %65 = vperm.xlu0 %1685, %v57_v28   ;;  %s1723_s20 = smov 125   ;;  %s1724_s21 = smov 124   ;;  %v1553_v9 = vpack.c.bf16 %v760_v8, %v759_v6  ;;  %v744_v11 = vld [vmem:[%s2356_s5 + $0x8] sm:$0xff]  ;;  %v745_v15 = vld [vmem:[%s2356_s5 + $0x10] sm:$0xff]  ;;  %v746_v16 = vld [vmem:[%s2356_s5 + $0x18] sm:$0xff]  ;;  %v1557_v17 = vpack.c.bf16 %v762_v14, %v761_v12  ;;  %vm354_vm4 = vcmask 1031168  }
   0xf   :  { %1328 = vmatmul.mubr.msk.f32.gmra.mrb[2].mxu1 %vm68_vm1, %v37_v27  ;;  %1336 = vmatmul.mubr.msk.f32.gmra.mrb[2].mxu0 %vm68_vm1, %v37_v27  ;;  %v1555_v13 = vpack.c.bf16 %v744_v11, %v743_v10  ;;  %v763_v18 = vld [vmem:[%s2356_s5 + $0xa0] sm:$0xff]  ;;  %v764_v19 = vld [vmem:[%s2356_s5 + $0xa8] sm:$0xff]  ;;  %v1559_v20 = vpack.c.bf16 %v746_v16, %v745_v15  ;;  %v765_v24 = vld [vmem:[%s2356_s5 + $0xb0] sm:$0xff]  ;;  %vm363_vm5 = vcmask 965632   ;;  %vm383_vm6 = vcmask 48128   ;;  %s1727_s25 = smov 16  }
  0x10   :  { %235 = vmatprep.mubr.f32.mxu1 %v1715_v7  ;;  %649 = vmatprep.mubr.f32.mxu0 %v1715_v7  ;;  %v1561_v21 = vpack.c.bf16 %v764_v19, %v763_v18  ;;  %v748_v23 = vld [vmem:[%s2356_s5 + $0x28] sm:$0xff]  ;;  %v766_v25 = vld [vmem:[%s2356_s5 + $0xb8] sm:$0xff]  ;;  %v749_v28 = vld [vmem:[%s2356_s5 + $0x30] sm:$0xff]  ;;  %vm361_vm7 = vcmask 1048024   ;;  %vm446_vm8 = vcmask 1022976   ;;  %vm469_vm9 = vcmask 39936  }
  0x11   :  { %1330 = vmatpush1.msk.msra.mxu1 %vm75_vm0, %v52_v29  ;;  %v750_v29 = vld [vmem:[%s2356_s5 + $0x38] sm:$0xff]  ;;  %vm523_vm10 = vcmask 1014784   ;;  %vm406_vm11 = vcmask 31744   ;;  %vm490_vm12 = vcmask 23552   ;;  %vm578_vm13 = vcmask 654336   ;;  %s1729_s30 = smov 18  }
  0x12   :  { %1554 = vmatprep.subr.bf16.mxu1 %v1553_v9  ;;  %vm796_vm14 = vcmask 1045504   ;;  %vm950_vm15 = vcmask 139264   ;;  %s1730_s4 = smov 36   ;;  %s1733_s22 = smov 54   ;;  %vm965_vm0 = vcmask 286864  }
  0x13   :  { %1331 = vmatmul.mubr.msk.f32.vlgmr.msra.gmra.mrb[4].mxu1 %vm68_vm1, %v36_v22  ;;  %v747_v22 = vld [vmem:[%s2356_s5 + $0x20] sm:$0xff]  ;;  %s1734_s28 = smov 108   ;;  %s1735_s16 = smov 34  }
  0x14   :  { %241 = vmatprep.mubr.f32.mxu1 %v1715_v7  ;;  %1556 = vmatpush3.bf16.msra.mxu1 %v1555_v13  ;;  %v1563_v26 = vpack.c.bf16 %v748_v23, %v747_v22 }
  0x15   :  { %1558 = vmatprep.subr.bf16.mxu1 %v1557_v17 }
  0x17   :  { %1332 = vmatmul.mubr.msk.f32.gmra.mrb[6].mxu1 %vm68_vm1, %v37_v27  ;;  %v1565_v27 = vpack.c.bf16 %v766_v25, %v765_v24  ;;  %vm971_vm1 = vcmask 434464  }
  0x18   :  { %1560 = vmatpush3.bf16.msra.mxu1 %v1559_v20 }
  0x19   :  { %1562 = vmatprep.subr.bf16.mxu1 %v1561_v21 }
  0x1c   :  { %1564 = vmatpush3.bf16.msra.mxu1 %v1563_v26 }
  0x1d   :  { %1566 = vmatprep.subr.bf16.mxu1 %v1565_v27 }
  0x88   :  { %v1879_v30 = vpop.permute.xlu0 %60 }
  0x8d   :  { %v1888_v39 = vpop.permute.xlu0 %65 }
  0xde   :  { %v160_v31 = vpop.f32.mrb[0].mxu1  ;;  %v314_v33 = vpop.f32.mrb[0].mxu0 }
  0xdf   :  { %v161_v32 = vadd.f32 %v160_v31, %v1879_v30  ;;  %v162_v34 = vpop.f32.mrb[1].mxu1  ;;  %v315_v35 = vadd.f32 %v314_v33, %v1879_v30  ;;  %v1884_v37 = vpop.f32.mrb[1].mxu0  ;;  %v768_v31 = vld [vmem:[%s2356_s5 + $0xc8] sm:$0xff] }
  0xe0   :  { %v163_v36 = vadd.f32 %v162_v34, %v1879_v30  ;;  %v317_v0 = vadd.f32 %v1884_v37, %v1879_v30  ;;  %v751_v34 = vld [vmem:[%s2356_s5 + $0x40] sm:$0xff]  ;;  %v770_v37 = vld [vmem:[%s2356_s5 + $0xd8] sm:$0xff] }
  0xe1   :  { %v1886_v38 = vmax.f32 %v161_v32, 0.0  ;;  %v329_v40 = vmax.f32 %v315_v35, 0.0  ;;  %v1567_v32 = vpack.c.bf16 %v750_v29, %v749_v28  ;;  %v752_v35 = vld [vmem:[%s2356_s5 + $0x48] sm:$0xff] }
  0xe2   :  { %v326_v41 = vmax.f32 %v163_v36, 0.0  ;;  %v166_v42 = vpop.f32.mrb[2].mxu1  ;;  %v320_v44 = vpop.f32.mrb[2].mxu0  ;;  %v330_v1 = vmax.f32 %v317_v0, 0.0  ;;  %v769_v36 = vld [vmem:[%s2356_s5 + $0xd0] sm:$0xff] }
  0xe3   :  { %v167_v43 = vadd.f32 %v166_v42, %v1888_v39  ;;  %v168_v45 = vpop.f32.mrb[3].mxu1  ;;  %v1891_v46 = vpop.f32.mrb[3].mxu0  ;;  %398 = vrot.lane.b32.xlu0 %v329_v40, %s1717_s0  ;;  %375 = vrot.lane.b32.xlu1 %v329_v40, %s1718_s1  ;;  %v321_v52 = vadd.f32 %v320_v44, %v1888_v39  ;;  %v754_v42 = vld [vmem:[%s2356_s5 + $0x58] sm:$0xff]  ;;  %v772_v44 = vld [vmem:[%s2356_s5 + $0xe8] sm:$0xff] }
  0xe4   :  { %v169_v47 = vadd.f32 %v168_v45, %v1888_v39  ;;  %339 = vst.msk [vmem:[#allocation2 + $0x8] sm:$0xff] %vm338_vm2, %v326_v41  ;;  %v323_v2 = vadd.f32 %v1891_v46, %v1888_v39  ;;  %1568 = vmatpush3.bf16.msra.mxu1 %v1567_v32 }
  0xe5   :  { %v1897_v48 = vmax.f32 %v167_v43, 0.0  ;;  %v335_v55 = vmax.f32 %v321_v52, 0.0  ;;  %v771_v43 = vld [vmem:[%s2356_s5 + $0xe0] sm:$0xff] }
  0xe6   :  { %v332_v49 = vmax.f32 %v169_v47, 0.0  ;;  %v237_v50 = vpop.f32.mrb[4].mxu1  ;;  %v336_v4 = vmax.f32 %v323_v2, 0.0  ;;  %v1577_v46 = vpack.c.bf16 %v772_v44, %v771_v43 }
  0xe7   :  { %v239_v51 = vpop.f32.mrb[5].mxu1  ;;  %461 = vrot.lane.b32.xlu1 %v329_v40, %s1719_s2  ;;  %419 = vrot.lane.b32.xlu0 %v1886_v38, %s1720_s17  ;;  %v238_v56 = vadd.f32 %v237_v50, %v1879_v30 }
  0xe8   :  { %341 = vst.msk [vmem:[#allocation2 + $0x20] sm:$0xff] %vm338_vm2, %v332_v49  ;;  %v240_v58 = vadd.f32 %v239_v51, %v1879_v30  ;;  %v767_v30 = vld [vmem:[%s2356_s5 + $0xc0] sm:$0xff] }
  0xe9   :  { %v327_v57 = vmax.f32 %v238_v56, 0.0  ;;  %v1569_v33 = vpack.c.bf16 %v768_v31, %v767_v30  ;;  %v1515_v31 = vpack.c.bf16 %v1897_v48, %v1886_v38 }
  0xea   :  { %v243_v53 = vpop.f32.mrb[6].mxu1  ;;  %v328_v59 = vmax.f32 %v240_v58, 0.0 }
  0xeb   :  { %v245_v54 = vpop.f32.mrb[7].mxu1  ;;  %346 = vrot.lane.b32.xlu1 %v326_v41, %s1721_s18  ;;  %482 = vrot.lane.b32.xlu0 %v329_v40, %s1722_s19  ;;  %v244_v60 = vadd.f32 %v243_v53, %v1888_v39  ;;  %v1573_v40 = vpack.c.bf16 %v770_v37, %v769_v36 }
  0xec   :  { %v246_v61 = vadd.f32 %v245_v54, %v1888_v39  ;;  %v1571_v39 = vpack.c.bf16 %v752_v35, %v751_v34  ;;  %1570 = vmatprep.subr.bf16.mxu1 %v1569_v33 }
  0xed   :  { %v333_v62 = vmax.f32 %v244_v60, 0.0 }
  0xee   :  { %v334_v63 = vmax.f32 %v246_v61, 0.0  ;;  %1572 = vmatpush3.bf16.msra.mxu1 %v1571_v39 }
  0xef   :  { %381 = vrot.lane.b32.xlu1 %v335_v55, %s1718_s1  ;;  %421 = vrot.lane.b32.xlu0 %v326_v41, %s1720_s17 }
  0xf0   :  { %1574 = vmatprep.subr.bf16.mxu1 %v1573_v40 }
  0xf3   :  { %402 = vrot.lane.b32.xlu1 %v335_v55, %s1717_s0  ;;  %438 = vrot.lane.b32.xlu0 %v326_v41, %s1723_s20 }
  0xf7   :  { %423 = vrot.lane.b32.xlu1 %v1897_v48, %s1720_s17  ;;  %350 = vrot.lane.b32.xlu0 %v332_v49, %s1721_s18 }
  0xfb   :  { %467 = vrot.lane.b32.xlu1 %v335_v55, %s1719_s2  ;;  %442 = vrot.lane.b32.xlu0 %v332_v49, %s1723_s20 }
  0xff   :  { %486 = vrot.lane.b32.xlu1 %v335_v55, %s1722_s19  ;;  %371 = vrot.lane.b32.xlu0 %v327_v57, %s1718_s1 }
 0x103   :  { %425 = vrot.lane.b32.xlu1 %v332_v49, %s1720_s17  ;;  %457 = vrot.lane.b32.xlu0 %v327_v57, %s1719_s2 }
 0x107   :  { %348 = vrot.lane.b32.xlu1 %v327_v57, %s1721_s18  ;;  %373 = vrot.lane.b32.xlu0 %v328_v59, %s1718_s1 }
 0x10b   :  { %440 = vrot.lane.b32.xlu1 %v327_v57, %s1723_s20  ;;  %459 = vrot.lane.b32.xlu0 %v328_v59, %s1719_s2 }
 0x10f   :  { %352 = vrot.lane.b32.xlu1 %v333_v62, %s1721_s18  ;;  %379 = vrot.lane.b32.xlu0 %v334_v63, %s1718_s1 }
 0x113   :  { %377 = vrot.lane.b32.xlu1 %v333_v62, %s1718_s1  ;;  %515 = vrot.lane.b32.xlu0 %v326_v41, %s1724_s21  ;;  %v753_v41 = vld [vmem:[%s2356_s5 + $0x50] sm:$0xff]  ;;  %s1731_s1 = smov 72  }
 0x114   :  { %v1575_v45 = vpack.c.bf16 %v754_v42, %v753_v41 }
 0x116   :  { %1576 = vmatpush3.bf16.msra.mxu1 %v1575_v45 }
 0x117   :  { %444 = vrot.lane.b32.xlu1 %v333_v62, %s1723_s20  ;;  %465 = vrot.lane.b32.xlu0 %v334_v63, %s1719_s2  ;;  %s1736_s20 = smov 52  }
 0x118   :  { %1578 = vmatprep.subr.bf16.mxu1 %v1577_v46 }
 0x11b   :  { %463 = vrot.lane.b32.xlu1 %v333_v62, %s1719_s2  ;;  %519 = vrot.lane.b32.xlu0 %v332_v49, %s1724_s21  ;;  %s1732_s2 = smov 90  }
 0x11f   :  { %517 = vrot.lane.b32.xlu1 %v327_v57, %s1724_s21  ;;  %501 = vrot.lane.b32.xlu0 %v1886_v38, %s1721_s18 }
 0x123   :  { %521 = vrot.lane.b32.xlu1 %v333_v62, %s1724_s21  ;;  %400 = vrot.lane.b32.xlu0 %v330_v1, %s1717_s0 }
 0x127   :  { %503 = vrot.lane.b32.xlu1 %v1897_v48, %s1721_s18  ;;  %484 = vrot.lane.b32.xlu0 %v330_v1, %s1722_s19 }
 0x12b   :  { %404 = vrot.lane.b32.xlu1 %v336_v4, %s1717_s0  ;;  %570 = vperm.xlu0 %1685, %v566_v3  }
 0x12f   :  { %488 = vrot.lane.b32.xlu1 %v336_v4, %s1722_s19 }
 0x133   :  { %575 = vperm.xlu1 %1686, %v567_v5  }
 0x155   :  { %v2021_v47 = vpop.permute.xlu0 %398  ;;  %v376_v49 = vpop.permute.xlu1 %375 }
 0x159   :  { %v462_v50 = vpop.permute.xlu1 %461  ;;  %v420_v51 = vpop.permute.xlu0 %419 }
 0x15d   :  { %v2023_v52 = vpop.permute.xlu1 %346  ;;  %v2025_v53 = vpop.permute.xlu0 %482 }
 0x15e   :  { %512 = vst.msk [vmem:[#allocation2 + $0xc8] sm:$0xff] %vm338_vm2, %v2023_v52 }
 0x161   :  { %v382_v54 = vpop.permute.xlu1 %381  ;;  %v422_v55 = vpop.permute.xlu0 %421 }
 0x162   :  { %v2030_v56 = vsel %vm427_vm3, %v420_v51, %v422_v55  ;;  %435 = vst.msk [vmem:[#allocation2 + $0x68] sm:$0xff] %vm338_vm2, %v422_v55 }
 0x165   :  { %v2033_v57 = vpop.permute.xlu1 %402  ;;  %v439_v58 = vpop.permute.xlu0 %438 }
 0x169   :  { %v424_v59 = vpop.permute.xlu1 %423  ;;  %v2035_v60 = vpop.permute.xlu0 %350 }
 0x16a   :  { %514 = vst.msk [vmem:[#allocation2 + $0xe0] sm:$0xff] %vm338_vm2, %v2035_v60 }
 0x16d   :  { %v468_v61 = vpop.permute.xlu1 %467  ;;  %v443_v62 = vpop.permute.xlu0 %442 }
 0x171   :  { %v2039_v63 = vpop.permute.xlu1 %486  ;;  %v372_v0 = vpop.permute.xlu0 %371 }
 0x175   :  { %v426_v1 = vpop.permute.xlu1 %425  ;;  %v458_v2 = vpop.permute.xlu0 %457 }
 0x176   :  { %v2042_v3 = vsel %vm427_vm3, %v424_v59, %v426_v1  ;;  %437 = vst.msk [vmem:[#allocation2 + $0x80] sm:$0xff] %vm338_vm2, %v426_v1  ;;  %vm991_vm3 = vcmask 729664  }
 0x177   :  { %v1523_v45 = vpack.c.bf16 %v2042_v3, %v2030_v56 }
 0x179   :  { %v349_v4 = vpop.permute.xlu1 %348  ;;  %v374_v5 = vpop.permute.xlu0 %373 }
 0x17a   :  { %v355_v6 = vsel %vm354_vm4, %v2023_v52, %v349_v4  ;;  %364 = vst.msk [vmem:[#allocation2 + $0x10] sm:$0xff] %vm363_vm5, %v349_v4  ;;  %v384_v8 = vsel %vm383_vm6, %v372_v0, %v374_v5  ;;  %v385_v9 = vsel %vm383_vm6, %v374_v5, %v376_v49 }
 0x17b   :  { %362 = vst.msk [vmem:[#allocation2 + $0x8] sm:$0xff] %vm361_vm7, %v355_v6  ;;  %v534_v6 = vld [vmem:[%s2354_s3] sm:$0xff] }
 0x17c   :  { %393 = vst.msk [vmem:[#allocation2 + $0x38] sm:$0xff] %vm338_vm2, %v385_v9 }
 0x17d   :  { %413 = vst.msk [vmem:[#allocation2 + $0x38] sm:$0xff] %vm361_vm7, %v2021_v47  ;;  %v441_v10 = vpop.permute.xlu1 %440  ;;  %v460_v11 = vpop.permute.xlu0 %459 }
 0x17e   :  { %v447_v12 = vsel %vm446_vm8, %v439_v58, %v441_v10  ;;  %454 = vst.msk [vmem:[#allocation2 + $0x70] sm:$0xff] %vm363_vm5, %v441_v10  ;;  %v2057_v13 = vsel %vm469_vm9, %v458_v2, %v460_v11  ;;  %v471_v14 = vsel %vm469_vm9, %v460_v11, %v462_v50 }
 0x17f   :  { %453 = vst.msk [vmem:[#allocation2 + $0x68] sm:$0xff] %vm361_vm7, %v447_v12 }
 0x180   :  { %479 = vst.msk [vmem:[#allocation2 + $0x98] sm:$0xff] %vm338_vm2, %v471_v14 }
 0x181   :  { %497 = vst.msk [vmem:[#allocation2 + $0x98] sm:$0xff] %vm361_vm7, %v2025_v53  ;;  %v353_v15 = vpop.permute.xlu1 %352  ;;  %v380_v16 = vpop.permute.xlu0 %379  ;;  %v538_v4 = vld [vmem:[#allocation2 + $0x10] sm:$0xff] }
 0x182   :  { %v356_v17 = vsel %vm354_vm4, %v2035_v60, %v353_v15  ;;  %366 = vst.msk [vmem:[#allocation2 + $0x28] sm:$0xff] %vm363_vm5, %v353_v15  ;;  %v387_v18 = vsel %vm383_vm6, %v380_v16, %v382_v54  ;;  %v537_v26 = vld [vmem:[#allocation2 + $0x8] sm:$0xff] }
 0x183   :  { %365 = vst.msk [vmem:[#allocation2 + $0x20] sm:$0xff] %vm361_vm7, %v356_v17 }
 0x184   :  { %395 = vst.msk [vmem:[#allocation2 + $0x50] sm:$0xff] %vm338_vm2, %v387_v18  ;;  %v543_v29 = vld [vmem:[#allocation2 + $0x38] sm:$0xff]  ;;  %v775_v18 = vld [vmem:[%s2356_s5 + $0x100] sm:$0xff] }
 0x185   :  { %415 = vst.msk [vmem:[#allocation2 + $0x50] sm:$0xff] %vm361_vm7, %v2033_v57  ;;  %v378_v19 = vpop.permute.xlu1 %377  ;;  %v516_v20 = vpop.permute.xlu0 %515  ;;  %v550_v11 = vld [vmem:[#allocation2 + $0x70] sm:$0xff] }
 0x186   :  { %v386_v21 = vsel %vm383_vm6, %v378_v19, %v380_v16  ;;  %v549_v38 = vld [vmem:[#allocation2 + $0x68] sm:$0xff]  ;;  %vm1004_vm6 = vcmask 1024864  }
 0x187   :  { %v1519_v36 = vpack.c.bf16 %v386_v21, %v384_v8  ;;  %v776_v19 = vld [vmem:[%s2356_s5 + $0x108] sm:$0xff] }
 0x188   :  { %v555_v43 = vld [vmem:[#allocation2 + $0x98] sm:$0xff]  ;;  %v1585_v21 = vpack.c.bf16 %v776_v19, %v775_v18  ;;  %v956_v19 = vlaneseq }
 0x189   :  { %v445_v22 = vpop.permute.xlu1 %444  ;;  %v466_v23 = vpop.permute.xlu0 %465  ;;  %v541_v1 = vld [vmem:[#allocation2 + $0x28] sm:$0xff] }
 0x18a   :  { %v448_v24 = vsel %vm446_vm8, %v443_v62, %v445_v22  ;;  %456 = vst.msk [vmem:[#allocation2 + $0x88] sm:$0xff] %vm363_vm5, %v445_v22  ;;  %v473_v25 = vsel %vm469_vm9, %v466_v23, %v468_v61  ;;  %v540_v27 = vld [vmem:[#allocation2 + $0x20] sm:$0xff]  ;;  %vm1014_vm8 = vcmask 124930  }
 0x18b   :  { %455 = vst.msk [vmem:[#allocation2 + $0x80] sm:$0xff] %vm361_vm7, %v448_v24  ;;  %v1513_v28 = vpack.c.bf16 %v540_v27, %v537_v26  ;;  %v755_v22 = vld [vmem:[%s2356_s5 + $0x60] sm:$0xff]  ;;  %v778_v26 = vld [vmem:[%s2356_s5 + $0x118] sm:$0xff] }
 0x18c   :  { %481 = vst.msk [vmem:[#allocation2 + $0xb0] sm:$0xff] %vm338_vm2, %v473_v25  ;;  %v546_v30 = vld [vmem:[#allocation2 + $0x50] sm:$0xff]  ;;  %vm978_vm2 = vcmask 582064  }
 0x18d   :  { %499 = vst.msk [vmem:[#allocation2 + $0xb0] sm:$0xff] %vm361_vm7, %v2039_v63  ;;  %v1517_v32 = vpack.c.bf16 %v546_v30, %v543_v29  ;;  %v464_v33 = vpop.permute.xlu1 %463  ;;  %1514 = vmatprep.subr.bf16.mxu0 %v1513_v28  ;;  %v520_v34 = vpop.permute.xlu0 %519  ;;  %v777_v25 = vld [vmem:[%s2356_s5 + $0x110] sm:$0xff]  ;;  %v774_v29 = vld [vmem:[%s2356_s5 + $0xf8] sm:$0xff] }
 0x18e   :  { %v472_v35 = vsel %vm469_vm9, %v464_v33, %v466_v23  ;;  %1516 = vmatpush1.bf16.msra.mxu0 %v1515_v31  ;;  %v756_v23 = vld [vmem:[%s2356_s5 + $0x68] sm:$0xff]  ;;  %v1589_v27 = vpack.c.bf16 %v778_v26, %v777_v25  ;;  %v773_v28 = vld [vmem:[%s2356_s5 + $0xf0] sm:$0xff]  ;;  %v1093_v25 = vld [vmem:[%s2357_s6 + $0x20] sm:$0xff] }
 0x18f   :  { %1518 = vmatprep.subr.bf16.mxu0 %v1517_v32  ;;  %v1527_v54 = vpack.c.bf16 %v472_v35, %v2057_v13  ;;  %v1579_v24 = vpack.c.bf16 %v756_v23, %v755_v22  ;;  %v1581_v30 = vpack.c.bf16 %v774_v29, %v773_v28  ;;  %v757_v31 = vld [vmem:[%s2356_s5 + $0x70] sm:$0xff]  ;;  %v758_v32 = vld [vmem:[%s2356_s5 + $0x78] sm:$0xff]  ;;  %v780_v35 = vld [vmem:[%s2356_s5 + $0x128] sm:$0xff] }
 0x190   :  { %v1583_v33 = vpack.c.bf16 %v758_v32, %v757_v31  ;;  %v1094_v26 = vld [vmem:[%s2357_s6 + $0x28] sm:$0xff]  ;;  %v1095_v29 = vld [vmem:[%s2357_s6 + $0x30] sm:$0xff] }
 0x191   :  { %v518_v37 = vpop.permute.xlu1 %517  ;;  %v502_v39 = vpop.permute.xlu0 %501  ;;  %v553_v10 = vld [vmem:[#allocation2 + $0x88] sm:$0xff]  ;;  %1580 = vmatpush3.bf16.msra.mxu1 %v1579_v24  ;;  %v957_v24 = vshrl.u32 %v956_v19, 7 }
 0x192   :  { %v524_v40 = vsel %vm523_vm10, %v516_v20, %v518_v37  ;;  %531 = vst.msk [vmem:[#allocation2 + $0xd0] sm:$0xff] %vm363_vm5, %v518_v37  ;;  %v505_v41 = vsel %vm354_vm4, %v502_v39, %v2023_v52  ;;  %1520 = vmatpush1.bf16.msra.mxu0 %v1519_v36  ;;  %v552_v48 = vld [vmem:[#allocation2 + $0x80] sm:$0xff]  ;;  %v1541_v12 = vpack.c.bf16 %v553_v10, %v550_v11  ;;  %v781_v37 = vld [vmem:[%s2356_s5 + $0x130] sm:$0xff]  ;;  %v782_v39 = vld [vmem:[%s2356_s5 + $0x138] sm:$0xff]  ;;  %v1725_v10 = vmov 0.0|0.0  }
 0x193   :  { %530 = vst.msk [vmem:[#allocation2 + $0xc8] sm:$0xff] %vm361_vm7, %v524_v40  ;;  %v1521_v42 = vpack.c.bf16 %v552_v48, %v549_v38  ;;  %1582 = vmatprep.subr.bf16.mxu1 %v1581_v30  ;;  %v1597_v40 = vpack.c.bf16 %v782_v39, %v781_v37  ;;  %v784_v38 = vld [vmem:[%s2356_s5 + $0x148] sm:$0xff]  ;;  %v1096_v30 = vld [vmem:[%s2357_s6 + $0x38] sm:$0xff]  ;;  %v1097_v37 = vld [vmem:[%s2357_s6 + $0x40] sm:$0xff] }
 0x194   :  { %v558_v44 = vld [vmem:[#allocation2 + $0xb0] sm:$0xff]  ;;  %v1623_v32 = vpack.c.bf16 %v1096_v30, %v1095_v29  ;;  %v1098_v39 = vld [vmem:[%s2357_s6 + $0x48] sm:$0xff] }
 0x195   :  { %v1525_v46 = vpack.c.bf16 %v558_v44, %v555_v43  ;;  %v522_v49 = vpop.permute.xlu1 %521  ;;  %v401_v50 = vpop.permute.xlu0 %400  ;;  %1522 = vmatprep.subr.bf16.mxu0 %v1521_v42  ;;  %1584 = vmatpush3.bf16.msra.mxu1 %v1583_v33  ;;  %v785_v42 = vld [vmem:[%s2356_s5 + $0x150] sm:$0xff]  ;;  %v786_v43 = vld [vmem:[%s2356_s5 + $0x158] sm:$0xff] }
 0x196   :  { %v525_v51 = vsel %vm523_vm10, %v520_v34, %v522_v49  ;;  %533 = vst.msk [vmem:[#allocation2 + $0xe8] sm:$0xff] %vm363_vm5, %v522_v49  ;;  %v407_v52 = vsel %vm406_vm11, %v2021_v47, %v401_v50  ;;  %1524 = vmatpush1.bf16.msra.mxu0 %v1523_v45  ;;  %v779_v34 = vld [vmem:[%s2356_s5 + $0x120] sm:$0xff]  ;;  %v1605_v44 = vpack.c.bf16 %v786_v43, %v785_v42  ;;  %v789_v50 = vld [vmem:[%s2356_s5 + $0x170] sm:$0x3f]  ;;  %vm1072_vm10 = vcmask 883712  }
 0x197   :  { %532 = vst.msk [vmem:[#allocation2 + $0xe0] sm:$0xff] %vm361_vm7, %v525_v51  ;;  %1526 = vmatprep.subr.bf16.mxu0 %v1525_v46  ;;  %v1593_v36 = vpack.c.bf16 %v780_v35, %v779_v34  ;;  %v787_v45 = vld [vmem:[%s2356_s5 + $0x160] sm:$0xff]  ;;  %v788_v46 = vld [vmem:[%s2356_s5 + $0x168] sm:$0xff]  ;;  %1613 = vmatprep.subr.bf16.mxu1 %v1725_v10  ;;  %v1099_v43 = vld [vmem:[%s2357_s6 + $0x50] sm:$0xff]  ;;  %vm1013_vm7 = vcmask 1041392  }
 0x198   :  { %414 = vst.msk [vmem:[#allocation2 + $0x40] sm:$0xff] %vm363_vm5, %v407_v52  ;;  %v1609_v49 = vpack.c.bf16 %v788_v46, %v787_v45  ;;  %vm1015_vm9 = vmor %vm1014_vm8, %vm1013_vm7 }
 0x199   :  { %v504_v55 = vpop.permute.xlu1 %503  ;;  %v485_v56 = vpop.permute.xlu0 %484  ;;  %v562_v17 = vld [vmem:[#allocation2 + $0xd0] sm:$0xff] }
 0x19a   :  { %v506_v58 = vsel %vm354_vm4, %v504_v55, %v2035_v60  ;;  %v491_v59 = vsel %vm490_vm12, %v2025_v53, %v485_v56  ;;  %1528 = vmatpush1.bf16.msra.mxu0 %v1527_v54  ;;  %v561_v62 = vld [vmem:[#allocation2 + $0xc8] sm:$0xff]  ;;  %v1533_v60 = vpack.c.bf16 %v541_v1, %v538_v4 }
 0x19b   :  { %498 = vst.msk [vmem:[#allocation2 + $0xa0] sm:$0xff] %vm363_vm5, %v491_v59  ;;  %v1531_v3 = vpack.c.bf16 %v506_v58, %v505_v41  ;;  %v783_v41 = vld [vmem:[%s2356_s5 + $0x140] sm:$0xff]  ;;  %s1728_s5 = smov 110  }
 0x19c   :  { %v1601_v48 = vpack.c.bf16 %v784_v38, %v783_v41  ;;  %v1626_v41 = vpack.c.bf16 %v1098_v39, %v1097_v37 }
 0x19d   :  { %v405_v47 = vpop.permute.xlu1 %404  ;;  %v565_v16 = vld [vmem:[#allocation2 + $0xe8] sm:$0xff] }
 0x19e   :  { %v408_v61 = vsel %vm406_vm11, %v2033_v57, %v405_v47  ;;  %v564_v0 = vld [vmem:[#allocation2 + $0xe0] sm:$0xff]  ;;  %v535_v57 = vld [vmem:[%s2354_s3 + $0x8] sm:$0x7]  ;;  %v1549_v20 = vpack.c.bf16 %v565_v16, %v562_v17  ;;  %v1726_v17 = vmov 1983009808   ;;  %vm1028_vm11 = vcmask 270464  }
 0x19f   :  { %416 = vst.msk [vmem:[#allocation2 + $0x58] sm:$0xff] %vm363_vm5, %v408_v61  ;;  %v1529_v2 = vpack.c.bf16 %v564_v0, %v561_v62  ;;  %v544_v8 = vld [vmem:[#allocation2 + $0x40] sm:$0xff]  ;;  %v954_v18 = vunpack.c.l.s4 %v1726_v17  ;;  %v1209_v17 = vld [vmem:[%s2359_s8 + $0x8] sm:$0xff] }
 0x1a1   :  { %v489_v5 = vpop.permute.xlu1 %488  ;;  %1530 = vmatprep.subr.bf16.mxu0 %v1529_v2  ;;  %v955_v23 = vunpack.c.0.s8 %v954_v18  ;;  %v1210_v18 = vld [vmem:[%s2359_s8 + $0x10] sm:$0xff] }
 0x1a2   :  { %v492_v53 = vsel %vm490_vm12, %v2039_v63, %v489_v5  ;;  %1532 = vmatpush1.bf16.msra.mxu0 %v1531_v3  ;;  %v556_v14 = vld [vmem:[#allocation2 + $0xa0] sm:$0xff]  ;;  %vm1035_vm12 = vcmask 418064  }
 0x1a3   :  { %500 = vst.msk [vmem:[#allocation2 + $0xb8] sm:$0xff] %vm363_vm5, %v492_v53  ;;  %1534 = vmatprep.subr.bf16.mxu0 %v1533_v60  ;;  %v958_v28 = vsub.s32 %v955_v23, %v957_v24  ;;  %v1213_v23 = vld [vmem:[%s2359_s8 + $0x28] sm:$0xff] }
 0x1a5   :  { %1337 = vmatmul.mubr.msk.f32.vlgmr.msra.gmra.mrb[4].mxu0 %vm578_vm13, %v534_v6 }
 0x1a6   :  { %1536 = vmatpush3.bf16.msra.mxu0 %v1533_v60  ;;  %v547_v9 = vld [vmem:[#allocation2 + $0x58] sm:$0xff]  ;;  %655 = vmatprep.mubr.f32.mxu0 %v1715_v7 }
 0x1a7   :  { %v1537_v63 = vpack.c.bf16 %v547_v9, %v544_v8  ;;  %v1089_v8 = vld [vmem:[%s2357_s6] sm:$0xff]  ;;  %v1090_v9 = vld [vmem:[%s2357_s6 + $0x8] sm:$0xff] }
 0x1a9   :  { %1538 = vmatprep.subr.bf16.mxu0 %v1537_v63  ;;  %1338 = vmatmul.mubr.msk.f32.gmra.mrb[6].mxu0 %vm578_vm13, %v535_v57 }
 0x1aa   :  { %1540 = vmatpush3.bf16.msra.mxu0 %v1537_v63  ;;  %v559_v13 = vld [vmem:[#allocation2 + $0xb8] sm:$0xff]  ;;  %1446 = vmatprep.mubr.msk.f32.mxu0 %vm578_vm13, %v534_v6  ;;  %v571_v51 = vpop.permute.xlu0 %570  ;;  %v1614_v63 = vpack.c.bf16 %v1090_v9, %v1089_v8  ;;  %v1111_v9 = vld [vmem:[%s2357_s6 + $0xb0] sm:$0xff] }
 0x1ab   :  { %1542 = vmatprep.subr.bf16.mxu0 %v1541_v12  ;;  %v1545_v15 = vpack.c.bf16 %v559_v13, %v556_v14 }
 0x1ae   :  { %1544 = vmatpush3.bf16.msra.mxu0 %v1541_v12 }
 0x1af   :  { %1546 = vmatprep.subr.bf16.mxu0 %v1545_v15 }
 0x1b2   :  { %1548 = vmatpush3.bf16.msra.mxu0 %v1545_v15  ;;  %v576_v58 = vpop.permute.xlu1 %575 }
 0x1b3   :  { %1550 = vmatprep.subr.bf16.mxu0 %v1549_v20 }
 0x1b6   :  { %1552 = vmatpush3.bf16.msra.mxu0 %v1549_v20  ;;  %v1091_v20 = vld [vmem:[%s2357_s6 + $0x10] sm:$0xff] }
 0x1b7   :  { %1586 = vmatprep.subr.bf16.mxu0 %v1585_v21 }
 0x1b9   :  { %1447 = vmatmul.mubr.msk.f32.vlgmr.msra.gmra.mrb[8].mxu0 %vm578_vm13, %v535_v57  ;;  %vm1041_vm13 = vcmask 565664  }
 0x1ba   :  { %1588 = vmatpush3.bf16.msra.mxu0 %v1585_v21  ;;  %v1092_v21 = vld [vmem:[%s2357_s6 + $0x18] sm:$0xff] }
 0x1bb   :  { %1590 = vmatprep.subr.bf16.mxu0 %v1589_v27  ;;  %v1617_v22 = vpack.c.bf16 %v1092_v21, %v1091_v20  ;;  %v1211_v20 = vld [vmem:[%s2359_s8 + $0x18] sm:$0xff] }
 0x1bc   :  { %v1653_v21 = vpack.c.bf16 %v1211_v20, %v1210_v18 }
 0x1be   :  { %1592 = vmatpush3.bf16.msra.mxu0 %v1589_v27  ;;  %v1620_v27 = vpack.c.bf16 %v1094_v26, %v1093_v25 }
 0x1bf   :  { %1594 = vmatprep.subr.bf16.mxu0 %v1593_v36 }
 0x1c2   :  { %1596 = vmatpush3.bf16.msra.mxu0 %v1593_v36 }
 0x1c3   :  { %1598 = vmatprep.subr.bf16.mxu0 %v1597_v40 }
 0x1c6   :  { %1600 = vmatpush3.bf16.msra.mxu0 %v1597_v40 }
 0x1c7   :  { %1602 = vmatprep.subr.bf16.mxu0 %v1601_v48 }
 0x1ca   :  { %1604 = vmatpush3.bf16.msra.mxu0 %v1601_v48 }
 0x1cb   :  { %1606 = vmatprep.subr.bf16.mxu0 %v1605_v44 }
 0x1ce   :  { %1608 = vmatpush3.bf16.msra.mxu0 %v1605_v44  ;;  %v1100_v44 = vld [vmem:[%s2357_s6 + $0x58] sm:$0xff] }
 0x1cf   :  { %1610 = vmatprep.subr.bf16.mxu0 %v1609_v49  ;;  %v1629_v45 = vpack.c.bf16 %v1100_v44, %v1099_v43 }
 0x1d2   :  { %1612 = vmatpush3.bf16.msra.mxu0 %v1609_v49 }
 0x1d3   :  { %1477 = vmatprep.subr.msk.mxu0 %vm796_vm14, %v789_v50 }
 0x1d6   :  { %1478 = vmatpush3.msk.msra.mxu0 %vm796_vm14, %v789_v50  ;;  %v1101_v50 = vld [vmem:[%s2357_s6 + $0x60] sm:$0xff] }
 0x1d7   :  { %1649 = vmatprep.subr.bf16.mxu0 %v1725_v10 }
 0x278   :  { %v651_v52 = vpop.f32.mrb[4].mxu0 }
 0x279   :  { %v652_v54 = vadd.f32 %v651_v52, %v571_v51  ;;  %v653_v55 = vpop.f32.mrb[5].mxu0 }
 0x27a   :  { %v654_v56 = vadd.f32 %v653_v55, %v571_v51 }
 0x27b   :  { %v737_v61 = vmax.f32 %v652_v54, 0.0 }
 0x27c   :  { %v738_v59 = vmax.f32 %v654_v56, 0.0  ;;  %v657_v47 = vpop.f32.mrb[6].mxu0  ;;  %v1103_v56 = vld [vmem:[%s2357_s6 + $0x70] sm:$0xff] }
 0x27d   :  { %v658_v62 = vadd.f32 %v657_v47, %v576_v58  ;;  %v659_v0 = vpop.f32.mrb[7].mxu0 }
 0x27e   :  { %864 = vmatprep.mubr.f32.mxu1 %v738_v59  ;;  %v660_v1 = vadd.f32 %v659_v0, %v576_v58  ;;  %v1106_v0 = vld [vmem:[%s2357_s6 + $0x88] sm:$0xff] }
 0x27f   :  { %865 = vmatmul.mubr.f32.vlgmr.msra.gmra.mrb[8].mxu1 %v737_v61  ;;  %v740_v2 = vmax.f32 %v658_v62, 0.0  ;;  %v1105_v62 = vld [vmem:[%s2357_s6 + $0x80] sm:$0xff] }
 0x280   :  { %v741_v3 = vmax.f32 %v660_v1, 0.0  ;;  %1615 = vmatpush1.bf16.msra.mxu1 %v1614_v63  ;;  %v1638_v1 = vpack.c.bf16 %v1106_v0, %v1105_v62  ;;  %v1112_v63 = vld [vmem:[%s2357_s6 + $0xb8] sm:$0xff] }
 0x281   :  { %1616 = vmatprep.subr.bf16.mxu1 %v1725_v10 }
 0x282   :  { %869 = vmatprep.mubr.f32.mxu1 %v741_v3 }
 0x283   :  { %870 = vmatmul.mubr.f32.gmra.mrb[10].mxu1 %v740_v2 }
 0x284   :  { %1618 = vmatpush1.bf16.msra.mxu1 %v1617_v22  ;;  %v1212_v22 = vld [vmem:[%s2359_s8 + $0x20] sm:$0xff] }
 0x285   :  { %1619 = vmatprep.subr.bf16.mxu1 %v1725_v10  ;;  %v1656_v24 = vpack.c.bf16 %v1213_v23, %v1212_v22 }
 0x288   :  { %1621 = vmatpush1.bf16.msra.mxu1 %v1620_v27 }
 0x289   :  { %1622 = vmatprep.subr.bf16.mxu1 %v1725_v10 }
 0x28c   :  { %v1448_v4 = vpop.f32.mrb[8].mxu0  ;;  %1624 = vmatpush1.bf16.msra.mxu1 %v1623_v32 }
 0x28d   :  { %v734_v5 = vadd.f32 %v1448_v4, %v576_v58  ;;  %v728_v60 = vpop.f32.mrb[9].mxu0  ;;  %1625 = vmatprep.subr.bf16.mxu1 %v1725_v10  ;;  %v1104_v58 = vld [vmem:[%s2357_s6 + $0x78] sm:$0xff]  ;;  %v1107_v4 = vld [vmem:[%s2357_s6 + $0x90] sm:$0xff] }
 0x28e   :  { %v729_v53 = vadd.f32 %v728_v60, %v571_v51  ;;  %v1102_v51 = vld [vmem:[%s2357_s6 + $0x68] sm:$0xff]  ;;  %v1635_v59 = vpack.c.bf16 %v1104_v58, %v1103_v56 }
 0x28f   :  { %v742_v57 = vmax.f32 %v734_v5, 0.0  ;;  %v1632_v52 = vpack.c.bf16 %v1102_v51, %v1101_v50  ;;  %v1108_v5 = vld [vmem:[%s2357_s6 + $0x98] sm:$0xff]  ;;  %v1214_v51 = vld [vmem:[%s2359_s8 + $0x30] sm:$0xff] }
 0x290   :  { %v739_v6 = vmax.f32 %v729_v53, 0.0  ;;  %1627 = vmatpush1.bf16.msra.mxu1 %v1626_v41  ;;  %v1641_v60 = vpack.c.bf16 %v1108_v5, %v1107_v4 }
 0x291   :  { %1628 = vmatprep.subr.bf16.mxu1 %v1725_v10 }
 0x292   :  { %1479 = vmatprep.mubr.msk.f32.mxu0 %vm363_vm5, %v739_v6  ;;  %v1109_v6 = vld [vmem:[%s2357_s6 + $0xa0] sm:$0xff] }
 0x293   :  { %1480 = vmatmul.mubr.msk.f32.vlgmr.msra.gmra.mrb[10].mxu0 %vm363_vm5, %v742_v57  ;;  %v1110_v57 = vld [vmem:[%s2357_s6 + $0xa8] sm:$0xff]  ;;  %vm998_vm5 = vcmask 877264  }
 0x294   :  { %1630 = vmatpush1.bf16.msra.mxu1 %v1629_v45  ;;  %v1644_v8 = vpack.c.bf16 %v1110_v57, %v1109_v6 }
 0x295   :  { %1631 = vmatprep.subr.bf16.mxu1 %v1725_v10 }
 0x298   :  { %1633 = vmatpush1.bf16.msra.mxu1 %v1632_v52  ;;  %v1215_v52 = vld [vmem:[%s2359_s8 + $0x38] sm:$0xff] }
 0x299   :  { %1634 = vmatprep.subr.bf16.mxu1 %v1725_v10 }
 0x29c   :  { %1636 = vmatpush1.bf16.msra.mxu1 %v1635_v59 }
 0x29d   :  { %1637 = vmatprep.subr.bf16.mxu1 %v1725_v10 }
 0x2a0   :  { %1639 = vmatpush1.bf16.msra.mxu1 %v1638_v1 }
 0x2a1   :  { %1640 = vmatprep.subr.bf16.mxu1 %v1725_v10 }
 0x2a4   :  { %1642 = vmatpush1.bf16.msra.mxu1 %v1641_v60 }
 0x2a5   :  { %1643 = vmatprep.subr.bf16.mxu1 %v1725_v10 }
 0x2a8   :  { %1645 = vmatpush1.bf16.msra.mxu1 %v1644_v8 }
 0x2a9   :  { %1646 = vmatprep.subr.bf16.mxu1 %v1725_v10 }
 0x352   :  { %v1394_v11 = vpop.f32.mrb[8].mxu1 }
 0x353   :  { %v1395_v12 = vpop.f32.mrb[9].mxu1 }
 0x354   :  { %v1396_v13 = vadd.f32 %v1395_v12, %v1394_v11  ;;  %v1647_v12 = vpack.c.bf16 %v1112_v63, %v1111_v9 }
 0x356   :  { %v1397_v14 = vpop.f32.mrb[10].mxu1  ;;  %1648 = vmatpush1.bf16.msra.mxu1 %v1647_v12 }
 0x357   :  { %v1398_v15 = vpop.f32.mrb[11].mxu1  ;;  %1185 = vmatprep.subr.mxu1 %v1715_v7 }
 0x358   :  { %v1399_v16 = vadd.f32 %v1398_v15, %v1397_v14  ;;  %v1113_v14 = vld [vmem:[%s2357_s6 + $0xc0] sm:$0x3f] }
 0x35a   :  { %1346 = vmatpush1.msk.msra.mxu1 %vm796_vm14, %v1113_v14  ;;  %vm1131_vm14 = vcmask 572416  }
 0x366   :  { %v1481_v31 = vpop.f32.mrb[10].mxu0 }
 0x367   :  { %v947_v33 = vadd.f32 %v1481_v31, %v1399_v16  ;;  %v941_v34 = vpop.f32.mrb[11].mxu0  ;;  %v1208_v16 = vld [vmem:[%s2359_s8] sm:$0xff] }
 0x368   :  { %v942_v35 = vadd.f32 %v1396_v13, %v941_v34  ;;  %v1650_v19 = vpack.c.bf16 %v1209_v17, %v1208_v16 }
 0x369   :  { %v2215_v36 = vrot.slane %v947_v33, %v958_v28 }
 0x36a   :  { %v959_v40 = vrot.slane %v942_v35, %v958_v28  ;;  %951 = vst.msk [vmem:[#allocation3] sm:$0x1] %vm950_vm15, %v942_v35  ;;  %v980_v48 = vcombine.high %v942_v35, %v942_v35  ;;  %1651 = vmatpush3.bf16.msra.mxu0 %v1650_v19 }
 0x36b   :  { %1076 = vrot.lane.b32.xlu1 %v2215_v36, %s1721_s18  ;;  %1025 = vrot.lane.b32.xlu0 %v2215_v36, %s1727_s25  ;;  %v1030_v11 = vrot.slane %v2215_v36, 7  ;;  %v1037_v15 = vcombine.high %v2215_v36, %v2215_v36 }
 0x36c   :  { %v967_v38 = vcombine.high %v959_v40, %v959_v40  ;;  %v960_v42 = vrot.slane %v959_v40, 7  ;;  %v987_v46 = vrot.slane %v980_v48, %v958_v28  ;;  %1652 = vmatprep.subr.bf16.mxu0 %v1725_v10 }
 0x36d   :  { %v1031_v13 = vrot.slane %v1030_v11, 2 }
 0x36e   :  { %v2236_v49 = vrot.slane %v960_v42, 2  ;;  %v1000_v54 = vcombine.high %v987_v46, %v987_v46  ;;  %v973_v55 = vrot.slane %v967_v38, 7  ;;  %v993_v61 = vrot.slane %v987_v46, 7  ;;  %1654 = vmatpush3.bf16.msra.mxu0 %v1653_v21 }
 0x36f   :  { %1043 = vrot.lane.b32.xlu0 %v959_v40, %s1728_s5  ;;  %1049 = vrot.lane.b32.xlu1 %v967_v38, %s1729_s30 }
 0x370   :  { %v974_v47 = vrot.slane %v973_v55, 2  ;;  %v994_v2 = vrot.slane %v993_v61, 2  ;;  %v1006_v3 = vrot.slane %v1000_v54, 7  ;;  %1655 = vmatprep.subr.bf16.mxu0 %v1725_v10  ;;  %v1344_v55 = vld [vmem:[%s2358_s7] ss:$0 sm:$0xff]  ;;  %s1738_s7 = smov [#allocation4]  }
 0x371   :  { %v1348_v61 = vld [vmem:[%s2360_s9] ss:$0 sm:$0xff]  ;;  %s1317_s8 = sshll.u32 %s1738_s7, 4  ;;  %s1318_s8 = int_to_ptr.vmem [resolvable:$true] %s1317_s8 }
 0x372   :  { %v1007_v53 = vrot.slane %v1006_v3, 2  ;;  %1657 = vmatpush3.bf16.msra.mxu0 %v1656_v24  ;;  %s1691_s9 = scalar_lea.vmem %s1318_s8, 32  ;;  %p1696_p1 = scmp.lt.s32.totalorder %s1318_s8, %s1318_s8 }
 0x373   :  { %968 = vrot.lane.b32.xlu0 %v967_v38, %s1730_s4  ;;  %962 = vrot.lane.b32.xlu1 %v2236_v49, %s1729_s30  ;;  %p1692_p0 = scmp.ne.s32.totalorder %s1318_s8, %s1691_s9  ;;  %p1697_p2 = scmp.lt.s32.totalorder %s1691_s9, %s1691_s9 }
 0x374   :  { %1658 = vmatprep.subr.bf16.mxu0 %v1725_v10 }
 0x375   :  { %p1698_p3 = por %p1697_p2, %p1696_p1 }
 0x377   :  { %988 = vrot.lane.b32.xlu0 %v987_v46, %s1731_s1  ;;  %1065 = vrot.lane.b32.xlu1 %v1000_v54, %s1732_s2  ;;  %p1699_p4 = pnand %p1698_p3, %p1692_p0 }
 0x37b   :  { %1057 = vrot.lane.b32.xlu0 %v987_v46, %s1733_s22  ;;  %1053 = vrot.lane.b32.xlu1 %v974_v47, %s1730_s4 }
 0x37f   :  { %1001 = vrot.lane.b32.xlu0 %v1000_v54, %s1734_s28  ;;  %1061 = vrot.lane.b32.xlu1 %v994_v2, %s1731_s1  ;;  %v1659_v54 = vpack.c.bf16 %v1215_v52, %v1214_v51 }
 0x381   :  { %1660 = vmatpush3.bf16.msra.mxu0 %v1659_v54 }
 0x383   :  { %975 = vrot.lane.b32.xlu0 %v974_v47, %s1733_s22  ;;  %1008 = vrot.lane.b32.xlu1 %v1007_v53, %s1721_s18 }
 0x387   :  { %995 = vrot.lane.b32.xlu0 %v994_v2, %s1732_s2  ;;  %1069 = vrot.lane.b32.xlu1 %v1007_v53, %s1734_s28 }
 0x38b   :  { %1032 = vrot.lane.b32.xlu0 %v1031_v13, %s1735_s16  ;;  %1080 = vrot.lane.b32.xlu1 %v1031_v13, %s1727_s25 }
 0x38f   :  { %1038 = vrot.lane.b32.xlu0 %v1037_v15, %s1736_s20  ;;  %1084 = vrot.lane.b32.xlu1 %v1037_v15, %s1735_s16 }
 0x3dd   :  { %v1077_v25 = vpop.permute.xlu1 %1076  ;;  %v1026_v26 = vpop.permute.xlu0 %1025 }
 0x3e1   :  { %v1044_v27 = vpop.permute.xlu0 %1043  ;;  %v1050_v28 = vpop.permute.xlu1 %1049 }
 0x3e2   :  { %1046 = vst.msk [vmem:[#allocation3 + $0x1] sm:$0x1] %vm950_vm15, %v1044_v27  ;;  %vm1223_vm15 = vcmask 523264  }
 0x3e3   :  { %1048 = vst.msk [vmem:[#allocation3 + $0x1] sm:$0x1] %vm965_vm0, %v2236_v49 }
 0x3e4   :  { %1052 = vst.msk [vmem:[#allocation3 + $0x1] sm:$0x1] %vm971_vm1, %v1050_v28 }
 0x3e5   :  { %v969_v29 = vpop.permute.xlu0 %968  ;;  %v963_v30 = vpop.permute.xlu1 %962 }
 0x3e6   :  { %966 = vst.msk [vmem:[#allocation3] sm:$0x1] %vm965_vm0, %v963_v30  ;;  %vm1298_vm0 = vcmask 33792  }
 0x3e7   :  { %972 = vst.msk [vmem:[#allocation3] sm:$0x1] %vm971_vm1, %v969_v29 }
 0x3e9   :  { %v989_v31 = vpop.permute.xlu0 %988  ;;  %v1066_v32 = vpop.permute.xlu1 %1065 }
 0x3ed   :  { %v1058_v10 = vpop.permute.xlu0 %1057  ;;  %v1054_v33 = vpop.permute.xlu1 %1053 }
 0x3ee   :  { %1056 = vst.msk [vmem:[#allocation3 + $0x1] sm:$0x1] %vm978_vm2, %v1054_v33 }
 0x3ef   :  { %1060 = vst.msk [vmem:[#allocation3 + $0x1] sm:$0x1] %vm991_vm3, %v1058_v10 }
 0x3f1   :  { %v1002_v34 = vpop.permute.xlu0 %1001  ;;  %v1062_v35 = vpop.permute.xlu1 %1061 }
 0x3f2   :  { %1064 = vst.msk [vmem:[#allocation3 + $0x1] sm:$0x1] %vm998_vm5, %v1062_v35 }
 0x3f3   :  { %1068 = vst.msk [vmem:[#allocation3 + $0x1] sm:$0x1] %vm1004_vm6, %v1066_v32 }
 0x3f5   :  { %v976_v36 = vpop.permute.xlu0 %975  ;;  %v1009_v37 = vpop.permute.xlu1 %1008 }
 0x3f6   :  { %979 = vst.msk [vmem:[#allocation3] sm:$0x1] %vm978_vm2, %v976_v36  ;;  %v1010_v39 = vrot.slane %v1009_v37, 6 }
 0x3f7   :  { %992 = vst.msk [vmem:[#allocation3] sm:$0x1] %vm991_vm3, %v989_v31 }
 0x3f8   :  { %v1011_v48 = vsel %vm354_vm4, %v1010_v39, %v1009_v37  ;;  %vm1737_vm4 = vmmov 0  }
 0x3f9   :  { %v996_v40 = vpop.permute.xlu0 %995  ;;  %v1070_v41 = vpop.permute.xlu1 %1069  ;;  %1498 = vmatprep.mubr.msk.f32.mxu0 %vm1737_vm4, %v1715_v7 }
 0x3fa   :  { %999 = vst.msk [vmem:[#allocation3] sm:$0x1] %vm998_vm5, %v996_v40  ;;  %v1071_v38 = vrot.slane %v1070_v41, 6 }
 0x3fb   :  { %1005 = vst.msk [vmem:[#allocation3] sm:$0x1] %vm1004_vm6, %v1002_v34 }
 0x3fc   :  { %v1073_v42 = vsel %vm1072_vm10, %v1071_v38, %v1070_v41  ;;  %1016 = vst.msk [vmem:[#allocation3] sm:$0x5] %vm1015_vm9, %v1011_v48 }
 0x3fd   :  { %1075 = vst.msk [vmem:[#allocation3 + $0x1] sm:$0x5] %vm1015_vm9, %v1073_v42  ;;  %v1033_v43 = vpop.permute.xlu0 %1032  ;;  %v1081_v44 = vpop.permute.xlu1 %1080 }
 0x3fe   :  { %1029 = vst.msk [vmem:[#allocation3 + $0x2] sm:$0x1] %vm1028_vm11, %v1026_v26  ;;  %1079 = vst.msk [vmem:[#allocation3 + $0x3] sm:$0x1] %vm1028_vm11, %v1077_v25 }
 0x3ff   :  { %1036 = vst.msk [vmem:[#allocation3 + $0x2] sm:$0x1] %vm1035_vm12, %v1033_v43  ;;  %1083 = vst.msk [vmem:[#allocation3 + $0x3] sm:$0x1] %vm1035_vm12, %v1081_v44 }
 0x401   :  { %v1039_v45 = vpop.permute.xlu0 %1038  ;;  %v1085_v46 = vpop.permute.xlu1 %1084 }
 0x402   :  { %1042 = vst.msk [vmem:[#allocation3 + $0x2] sm:$0x1] %vm1041_vm13, %v1039_v45  ;;  %1087 = vst.msk [vmem:[#allocation3 + $0x3] sm:$0x1] %vm1041_vm13, %v1085_v46 }
 0x409   :  { %v1345_v49 = vld.sshfl [vmem:[#allocation3] sm:$0x33 pattern:$0x76325410] }
 0x40a   :  { %v1129_v50 = vcombine.high %v1345_v49, %v1345_v49 }
 0x40c   :  { %1347 = vmatprep.mubr.msk.f32.mxu1 %vm1131_vm14, %v1129_v50 }
 0x40d   :  { %1202 = vmatmul.mubr.f32.vlgmr.msra.gmra.mrb[12].mxu1 %v1345_v49 }
 0x4e0   :  { %v1203_v56 = vpop.f32.mrb[12].mxu1 }
 0x4e1   :  { %v1204_v58 = vadd.f32 %v1344_v55, %v1203_v56  ;;  %v1205_v59 = vpop.f32.mrb[13].mxu1 }
 0x4e3   :  { %v1207_v47 = vmax.f32 %v1204_v58, 0.0 }
 0x4e5   :  { %1499 = vmatmul.mubr.msk.f32.vlgmr.msra.gmra.mrb[12].mxu0 %vm1223_vm15, %v1207_v47 }
 0x5b8   :  { %v1293_v62 = vpop.f32.mrb[12].mxu0 }
 0x5b9   :  { %v1294_v0 = vadd.f32 %v1348_v61, %v1293_v62  ;;  %v1500_v1 = vpop.f32.mrb[13].mxu0 }
 0x5bb   :  { %v1297_v2 = vmax.f32 %v1294_v0, 0.0 }
 0x5bd   :  { %v1299_v7 = vsel %vm1298_vm0, %v1297_v2, -inf }
 0x5be   :  { %1300 = vmax.xlane.f32.xlu0 %v1299_v7 }
 0x64b   :  { %v1301_v3 = vpop.xlane.xlu0 %1300 }
 0x64c   :  { %v1302_v4 = vsub.f32 %v1297_v2, %v1301_v3 }
 0x64e   :  { %v1303_v5 = vmul.f32 1.442695, %v1302_v4 }
 0x650   :  { %1687 = vpow2.f32 %v1303_v5 }
 0x65a   :  { %v1688_v60 = vpop.eup %1687 }
 0x65b   :  { %v1305_v53 = vsel %vm1298_vm0, %v1688_v60, 0.0 }
 0x65c   :  { %1306 = vadd.xlane.f32.xlu1 %v1305_v53 }
 0x6e9   :  { %v1307_v6 = vpop.xlane.xlu1 %1306 }
 0x6ea   :  { %1689 = vrcp.f32 %v1307_v6 }
 0x6f4   :  { %v1690_v57 = vpop.eup %1689 }
 0x6f5   :  { %v1309_v8 = vmul.f32 %v1690_v57, %v1688_v60 }
 0x6f7   :  { %1310 = vst.msk [vmem:[#allocation4] sm:$0x3] %vm1298_vm0, %v1309_v8 }
 0x6f8   :  { %1702 = shalt.err (!%p1699_p4)
}
 0x6f9   :  { %s1703_s4 = scalar_lea.hbm %s2361_s10, 32 }
 0x6fa   :  { %p1704_p5 = scmp.ne.s32.totalorder %s2361_s10, %s1703_s4  ;;  %p1707_p6 = scmp.lt.u32.totalorder %s1703_s4, %s2361_s10 }
 0x6fc   :  { %p1709_p7 = pnand %p1707_p6, %p1704_p5 }
 0x6fe   :  { %1712 = shalt.err (!%p1709_p7)
}
 0x6ff   :  { %1320 = dma.vmem_to_hbm [thread:$0]  %s1318_s8, 32, %s2361_s10, [#allocation5]  }
 0x700   :  { %1713 = dma.done.wait [#allocation5], 32  }
 0x701   :  { %1714 = vsyncadd [#allocation5], 4294967264 }
 0x702   :  { %1324 = vsyncpa [#allocation5], 1 }

</bundles_post_ra>
